<compile_context>
chip_gen: v7x
topology: tpu7x:2x2x1
jax: 0.10.0
libtpu: 0.0.40
codegen_flags: <defaults>
</compile_context>

<pallas_src>
import jax
import jax.numpy as jnp
import numpy as np
from jax import lax
from jax.experimental import pallas as pl
from jax.experimental.pallas import tpu as pltpu

# Model config: RNNModel('LSTM', ntoken=NTOKEN, ninp=NINP, nhid=NHID, nlayers=NLAYERS)
RNN_TYPE = "LSTM"
NTOKEN = 128
NINP = 32
NHID = 32
NLAYERS = 2
SEQ = 8
BATCH = 2

BATCH_PAD = 8  # one f32 sublane tile

# Raw per-layer weights are stacked as (L, 4H, NHID); only this stacking (not the
# kernel itself) assumes the layer-0 input width equals nhid.
assert NINP == NHID, "stacked raw-weight init assumes ninp == nhid"
assert BATCH <= BATCH_PAD


def _rnn_lm_kernel(tok_ref, enc_ref, h0_ref, c0_ref, wih0_ref, wblk_ref, bwide_ref,
                   dec_w_ref, dec_b_ref, logits_ref, hn_ref, cn_ref):
    """Fused embedding + wavefront stacked LSTM + decoder; all operands in VMEM.

    tok_ref:    (SEQ*BP, 1)   int32  flattened (time-major) token ids, batch padded
    enc_ref:    (NTOKEN, NINP)       embedding table
    h0/c0_ref:  (BP, L*H)            combined initial states, lanes = [h_0 | h_1 | ...]
    wih0_ref:   (NINP, L*4H)         layer-0 W_ih^T scattered into gate-grouped cols
    wblk_ref:   (L*H, L*4H)          wavefront block matrix (Whh_l + Wih_{l+1}), scaled
    bwide_ref:  (1, L*4H)            all layers' (b_ih+b_hh), gate-grouped, scaled
    dec_w_ref:  (L*H, NTOKEN)        decoder weight^T, zero rows except top layer
    dec_b_ref:  (1, NTOKEN)          decoder bias
    logits_ref: (SEQ*BP, NTOKEN)     decoder output (lane-dense, 128 lanes)
    hn/cn_ref:  (BP, L*H)            combined final states
    """
    H = NHID
    L = NLAYERS
    BP = BATCH_PAD
    LH = L * H
    LG = L * 4 * H
    SB = SEQ * BP

    # ---- embedding gather (one-hot MXU matmul) + hoisted layer-0 input projection.
    vocab_ids = lax.broadcasted_iota(jnp.int32, (SB, NTOKEN), 1)
    onehot = (tok_ref[...] == vocab_ids).astype(jnp.float32)             # (SB, V)
    x = jnp.dot(onehot, enc_ref[...], preferred_element_type=jnp.float32)  # (SB, NINP)
    # base[t] = layer-0 gate pre-activations at time t placed in the gate-grouped
    # 256-wide layout, plus every layer's bias sitting in its own columns.
    base = (jnp.dot(x, wih0_ref[...], preferred_element_type=jnp.float32)
            + bwide_ref[...])                                             # (SB, LG)

    wblk = wblk_ref[...]                                                  # (LH, LG)
    hcat = h0_ref[...]                                                    # (BP, LH)
    ccat = c0_ref[...]                                                    # (BP, LH)

    # Lane index, hoisted: used only to mask the two boundary wave steps.
    lane_idx = lax.broadcasted_iota(jnp.int32, (BP, LH), 1)

    outs = []
    # Wavefront: at wave step s layer l processes time s - l (valid iff 0 <= s-l < SEQ).
    for s in range(SEQ + L - 1):
        t0 = min(s, SEQ - 1)   # layer-0 time index (clamped; result masked when invalid)
        g = (jnp.dot(hcat, wblk, preferred_element_type=jnp.float32)
             + base[t0 * BP:(t0 + 1) * BP, :])                            # (BP, LG)
        # Single full-width tanh; i/f/o pre-activations were pre-scaled by 0.5 so
        # 0.5*(1 + tanh) equals sigmoid of the original pre-activation.
        th = jnp.tanh(g)
        i_g = 0.5 * (1.0 + th[:, 0 * LH:1 * LH])
        f_g = 0.5 * (1.0 + th[:, 1 * LH:2 * LH])
        g_g = th[:, 2 * LH:3 * LH]
        o_g = 0.5 * (1.0 + th[:, 3 * LH:4 * LH])
        c_new = f_g * ccat + i_g * g_g
        h_new = o_g * jnp.tanh(c_new)

        if (L - 1) <= s <= (SEQ - 1):
            # All layers active: commit everything (the common, unmasked path).
            hcat, ccat = h_new, c_new
        else:
            # Boundary wave step: keep inactive layers' lanes untouched.
            mask = (lane_idx < (s + 1) * H) & (lane_idx >= (s - SEQ + 1) * H)
            hcat = jnp.where(mask, h_new, hcat)
            ccat = jnp.where(mask, c_new, ccat)

        if s >= L - 1:  # top layer just produced its output for time s - (L-1)
            outs.append(hcat)

    # ---- decoder: one lane-dense matmul over the whole sequence (off the chain).
    # dec_w_ref has zero rows for all but the top layer's lanes, so no slicing needed.
    out_seq = jnp.concatenate(outs, axis=0)                               # (SB, LH)
    logits_ref[...] = (jnp.dot(out_seq, dec_w_ref[...],
                               preferred_element_type=jnp.float32)
                       + dec_b_ref[...])
    hn_ref[...] = hcat
    cn_ref[...] = ccat


def _prep_kernel_params(wih, whh, bih, bhh, dec_w, dec_b):
    """Build the wavefront block matrix / wide projections with gate-grouped columns.

    Combined gate layout (width L*4H): [i_0..i_{L-1} | f_0.. | g_0.. | o_0..], each
    block H wide; i/f/o columns are pre-scaled by 0.5 for the sigmoid-via-tanh trick.
    """
    H, L = NHID, NLAYERS
    LH, LG = L * H, L * 4 * H
    gate_scale = np.concatenate([np.full(H, 0.5), np.full(H, 0.5),
                                 np.ones(H), np.full(H, 0.5)]).astype(np.float32)
    wih_s = np.asarray(wih) * gate_scale[None, :, None]          # (L, 4H, in)
    whh_s = np.asarray(whh) * gate_scale[None, :, None]          # (L, 4H, H)
    b_s = (np.asarray(bih) + np.asarray(bhh)) * gate_scale[None, :]   # (L, 4H)

    def col(l, gi):
        start = gi * LH + l * H
        return slice(start, start + H)

    wblk = np.zeros((LH, LG), np.float32)
    wih0_wide = np.zeros((NINP, LG), np.float32)
    bwide = np.zeros((1, LG), np.float32)
    for l in range(L):
        for gi in range(4):
            rows_g = slice(gi * H, (gi + 1) * H)
            # Layer l's own recurrence feeds its gates.
            wblk[l * H:(l + 1) * H, col(l, gi)] = whh_s[l, rows_g, :].T
            if l >= 1:
                # Layer l-1's hidden output is layer l's input within the same wave step.
                wblk[(l - 1) * H:l * H, col(l, gi)] = wih_s[l, rows_g, :].T
            else:
                wih0_wide[:, col(0, gi)] = wih_s[0, rows_g, :].T
            bwide[0, col(l, gi)] = b_s[l, rows_g]

    dec_w_wide = np.zeros((LH, NTOKEN), np.float32)
    dec_w_wide[(L - 1) * H:, :] = np.asarray(dec_w).T             # top layer only

    return dict(
        wih0_wide=jnp.asarray(wih0_wide),
        wblk=jnp.asarray(wblk),
        bwide=jnp.asarray(bwide),
        dec_w_wide=jnp.asarray(dec_w_wide),
        dec_b=jnp.asarray(dec_b)[None, :],
    )


def _to_combined(state_lbh):
    """(L, B, H) -> (BP, L*H), batch zero-padded, lanes = [h_0 | h_1 | ...]."""
    bsz = state_lbh.shape[1]
    s = jnp.transpose(state_lbh, (1, 0, 2)).reshape(bsz, NLAYERS * NHID)
    return jnp.pad(s, ((0, BATCH_PAD - bsz), (0, 0)))


def _from_combined(state_c, bsz):
    """(BP, L*H) -> (L, bsz, H)."""
    return jnp.transpose(state_c[:bsz].reshape(bsz, NLAYERS, NHID), (1, 0, 2))


def rnn_lm_forward(tokens, hidden, params):
    """Equivalent of RNNModel.forward(input, hidden) for rnn_type='LSTM' (eval mode)."""
    # TODO(synk): nn.Dropout / the LSTM's inter-layer dropout are train-time only;
    # this implements the eval-mode forward (dropout == identity).
    h0, c0 = hidden
    bsz = tokens.shape[1]

    tok_p = jnp.pad(tokens.astype(jnp.int32), ((0, 0), (0, BATCH_PAD - bsz)))
    tok_flat = tok_p.reshape(SEQ * BATCH_PAD, 1)            # padded rows use token 0
    h0c = _to_combined(h0)
    c0c = _to_combined(c0)

    vmem = pl.BlockSpec(memory_space=pltpu.MemorySpace.VMEM)

    logits_p, hnc, cnc = pl.pallas_call(
        _rnn_lm_kernel,
        out_shape=(
            jax.ShapeDtypeStruct((SEQ * BATCH_PAD, NTOKEN), jnp.float32),
            jax.ShapeDtypeStruct((BATCH_PAD, NLAYERS * NHID), jnp.float32),
            jax.ShapeDtypeStruct((BATCH_PAD, NLAYERS * NHID), jnp.float32),
        ),
        in_specs=[vmem] * 9,
        out_specs=(vmem, vmem, vmem),
    )(tok_flat, params["encoder_weight"], h0c, c0c,
      params["wih0_wide"], params["wblk"], params["bwide"],
      params["dec_w_wide"], params["dec_b"])

    logits = logits_p.reshape(SEQ, BATCH_PAD, NTOKEN)[:, :bsz, :]
    return logits, (_from_combined(hnc, bsz), _from_combined(cnc, bsz))


def init_params(key):
    """Deterministic parameter init mirroring RNNModel.__init__ / init_weights."""
    ks = jax.random.split(key, 6)
    initrange = 0.1
    enc_w = jax.random.uniform(ks[0], (NTOKEN, NINP), jnp.float32, -initrange, initrange)
    stdv = 1.0 / np.sqrt(NHID)                      # PyTorch default LSTM init
    wih = jax.random.uniform(ks[1], (NLAYERS, 4 * NHID, NHID), jnp.float32, -stdv, stdv)
    whh = jax.random.uniform(ks[2], (NLAYERS, 4 * NHID, NHID), jnp.float32, -stdv, stdv)
    bih = jax.random.uniform(ks[3], (NLAYERS, 4 * NHID), jnp.float32, -stdv, stdv)
    bhh = jax.random.uniform(ks[4], (NLAYERS, 4 * NHID), jnp.float32, -stdv, stdv)
    dec_w = jax.random.uniform(ks[5], (NTOKEN, NHID), jnp.float32, -initrange, initrange)
    dec_b = jnp.zeros((NTOKEN,), jnp.float32)       # decoder.bias.data.zero_()

    params = _prep_kernel_params(wih, whh, bih, bhh, dec_w, dec_b)
    params["encoder_weight"] = enc_w
    params["_raw"] = (wih, whh, bih, bhh, dec_w, dec_b)   # for the pure-JAX reference
    return params


def ref_forward(tokens, hidden, params):
    """Pure-JAX reference matching torch.nn.LSTM / Linear semantics."""
    wih, whh, bih, bhh, dec_w, dec_b = params["_raw"]
    h0, c0 = hidden
    x = params["encoder_weight"][tokens]
    hs, cs = [], []
    for l in range(NLAYERS):
        h, c = h0[l], c0[l]
        outs = []
        for t in range(SEQ):
            gates = x[t] @ wih[l].T + bih[l] + h @ whh[l].T + bhh[l]
            i = jax.nn.sigmoid(gates[:, :NHID])
            f = jax.nn.sigmoid(gates[:, NHID:2 * NHID])
            g = jnp.tanh(gates[:, 2 * NHID:3 * NHID])
            o = jax.nn.sigmoid(gates[:, 3 * NHID:])
            c = f * c + i * g
            h = o * jnp.tanh(c)
            outs.append(h)
        x = jnp.stack(outs, 0)
        hs.append(h)
        cs.append(c)
    logits = x @ dec_w.T + dec_b
    return logits, (jnp.stack(hs), jnp.stack(cs))


if __name__ == "__main__":
    key = jax.random.PRNGKey(0)
    kp, kt = jax.random.split(key)
    params = init_params(kp)

    tokens = jax.random.randint(kt, (SEQ, BATCH), 0, NTOKEN, dtype=jnp.int32)
    # init_hidden(bsz) for LSTM: tuple of zeros (nlayers, bsz, nhid)
    h0 = jnp.zeros((NLAYERS, BATCH, NHID), jnp.float32)
    c0 = jnp.zeros((NLAYERS, BATCH, NHID), jnp.float32)

    logits, (h_n, c_n) = rnn_lm_forward(tokens, (h0, c0), params)
    jax.block_until_ready((logits, h_n, c_n))

    ref_logits, (ref_h, ref_c) = ref_forward(tokens, (h0, c0), params)
    # Tolerance covers the sigmoid-via-tanh identity, the reassociated (wavefront,
    # fused-contraction) recurrence matmul, and TPU default matmul precision.
    np.testing.assert_allclose(np.asarray(logits), np.asarray(ref_logits), rtol=1e-3, atol=1e-3)
    np.testing.assert_allclose(np.asarray(h_n), np.asarray(ref_h), rtol=1e-3, atol=1e-3)
    np.testing.assert_allclose(np.asarray(c_n), np.asarray(ref_c), rtol=1e-3, atol=1e-3)

    print("KERNEL_OK")
</pallas_src>

<mosaic_0001>
module attributes {stable_mosaic.version = 11 : i64} {
  func.func @_rnn_lm_kernel(%arg0: memref<64x1xi32, #tpu.memory_space<vmem>>, %arg1: memref<128x32xf32, #tpu.memory_space<vmem>>, %arg2: memref<8x64xf32, #tpu.memory_space<vmem>>, %arg3: memref<8x64xf32, #tpu.memory_space<vmem>>, %arg4: memref<32x256xf32, #tpu.memory_space<vmem>>, %arg5: memref<64x256xf32, #tpu.memory_space<vmem>>, %arg6: memref<1x256xf32, #tpu.memory_space<vmem>>, %arg7: memref<64x128xf32, #tpu.memory_space<vmem>>, %arg8: memref<1x128xf32, #tpu.memory_space<vmem>>, %arg9: memref<64x128xf32, #tpu.memory_space<vmem>>, %arg10: memref<8x64xf32, #tpu.memory_space<vmem>>, %arg11: memref<8x64xf32, #tpu.memory_space<vmem>>) attributes {dimension_semantics = [], scalar_prefetch = 0 : i64, scratch_operands = 0 : i64, tpu.core_type = #tpu.core_type<tc>} {
    %0 = tpu.iota {dimensions = array<i32: 1>} : vector<64x128xi32>
    %c0 = arith.constant 0 : index
    %c0_0 = arith.constant 0 : index
    %1 = vector.load %arg0[%c0, %c0_0] : memref<64x1xi32, #tpu.memory_space<vmem>>, vector<64x1xi32>
    %2 = vector.broadcast %1 : vector<64x1xi32> to vector<64x128xi32>
    %3 = arith.cmpi eq, %2, %0 : vector<64x128xi32>
    %4 = arith.extui %3 : vector<64x128xi1> to vector<64x128xi32>
    %5 = arith.sitofp %4 : vector<64x128xi32> to vector<64x128xf32>
    %c0_1 = arith.constant 0 : index
    %c0_2 = arith.constant 0 : index
    %6 = vector.load %arg1[%c0_1, %c0_2] : memref<128x32xf32, #tpu.memory_space<vmem>>, vector<128x32xf32>
    %cst = arith.constant dense<0.000000e+00> : vector<64x32xf32>
    %7 = tpu.matmul %5, %6, %cst {dimension_numbers = #tpu.dot_dimension_numbers<[1], [0], [0], [1], [0, 0, 1, 1], [], []>} : vector<64x128xf32>, vector<128x32xf32>, vector<64x32xf32> -> vector<64x32xf32>
    %c0_3 = arith.constant 0 : index
    %c0_4 = arith.constant 0 : index
    %8 = vector.load %arg4[%c0_3, %c0_4] : memref<32x256xf32, #tpu.memory_space<vmem>>, vector<32x256xf32>
    %cst_5 = arith.constant dense<0.000000e+00> : vector<64x256xf32>
    %9 = tpu.matmul %7, %8, %cst_5 {dimension_numbers = #tpu.dot_dimension_numbers<[1], [0], [0], [1], [0, 0, 1, 1], [], []>} : vector<64x32xf32>, vector<32x256xf32>, vector<64x256xf32> -> vector<64x256xf32>
    %c0_6 = arith.constant 0 : index
    %c0_7 = arith.constant 0 : index
    %10 = vector.load %arg6[%c0_6, %c0_7] : memref<1x256xf32, #tpu.memory_space<vmem>>, vector<1x256xf32>
    %11 = vector.broadcast %10 : vector<1x256xf32> to vector<64x256xf32>
    %12 = arith.addf %9, %11 : vector<64x256xf32>
    %c0_8 = arith.constant 0 : index
    %c0_9 = arith.constant 0 : index
    %13 = vector.load %arg5[%c0_8, %c0_9] : memref<64x256xf32, #tpu.memory_space<vmem>>, vector<64x256xf32>
    %c0_10 = arith.constant 0 : index
    %c0_11 = arith.constant 0 : index
    %14 = vector.load %arg2[%c0_10, %c0_11] : memref<8x64xf32, #tpu.memory_space<vmem>>, vector<8x64xf32>
    %c0_12 = arith.constant 0 : index
    %c0_13 = arith.constant 0 : index
    %15 = vector.load %arg3[%c0_12, %c0_13] : memref<8x64xf32, #tpu.memory_space<vmem>>, vector<8x64xf32>
    %16 = tpu.iota {dimensions = array<i32: 1>} : vector<8x64xi32>
    %cst_14 = arith.constant dense<0.000000e+00> : vector<8x256xf32>
    %17 = tpu.matmul %14, %13, %cst_14 {dimension_numbers = #tpu.dot_dimension_numbers<[1], [0], [0], [1], [0, 0, 1, 1], [], []>} : vector<8x64xf32>, vector<64x256xf32>, vector<8x256xf32> -> vector<8x256xf32>
    %18 = vector.extract_strided_slice %12 {offsets = [0, 0], sizes = [8, 256], strides = [1, 1]} : vector<64x256xf32> to vector<8x256xf32>
    %19 = arith.addf %17, %18 : vector<8x256xf32>
    %20 = math.tanh %19 : vector<8x256xf32>
    %21 = vector.extract_strided_slice %20 {offsets = [0, 0], sizes = [8, 64], strides = [1, 1]} : vector<8x256xf32> to vector<8x64xf32>
    %cst_15 = arith.constant 1.000000e+00 : f32
    %22 = vector.broadcast %cst_15 : f32 to vector<8x64xf32>
    %23 = arith.addf %22, %21 : vector<8x64xf32>
    %cst_16 = arith.constant 5.000000e-01 : f32
    %24 = vector.broadcast %cst_16 : f32 to vector<8x64xf32>
    %25 = arith.mulf %24, %23 : vector<8x64xf32>
    %26 = vector.extract_strided_slice %20 {offsets = [0, 64], sizes = [8, 64], strides = [1, 1]} : vector<8x256xf32> to vector<8x64xf32>
    %cst_17 = arith.constant 1.000000e+00 : f32
    %27 = vector.broadcast %cst_17 : f32 to vector<8x64xf32>
    %28 = arith.addf %27, %26 : vector<8x64xf32>
    %cst_18 = arith.constant 5.000000e-01 : f32
    %29 = vector.broadcast %cst_18 : f32 to vector<8x64xf32>
    %30 = arith.mulf %29, %28 : vector<8x64xf32>
    %31 = vector.extract_strided_slice %20 {offsets = [0, 128], sizes = [8, 64], strides = [1, 1]} : vector<8x256xf32> to vector<8x64xf32>
    %32 = vector.extract_strided_slice %20 {offsets = [0, 192], sizes = [8, 64], strides = [1, 1]} : vector<8x256xf32> to vector<8x64xf32>
    %cst_19 = arith.constant 1.000000e+00 : f32
    %33 = vector.broadcast %cst_19 : f32 to vector<8x64xf32>
    %34 = arith.addf %33, %32 : vector<8x64xf32>
    %cst_20 = arith.constant 5.000000e-01 : f32
    %35 = vector.broadcast %cst_20 : f32 to vector<8x64xf32>
    %36 = arith.mulf %35, %34 : vector<8x64xf32>
    %37 = arith.mulf %30, %15 : vector<8x64xf32>
    %38 = arith.mulf %25, %31 : vector<8x64xf32>
    %39 = arith.addf %37, %38 : vector<8x64xf32>
    %40 = math.tanh %39 : vector<8x64xf32>
    %41 = arith.mulf %36, %40 : vector<8x64xf32>
    %c32_i32 = arith.constant 32 : i32
    %42 = vector.broadcast %c32_i32 : i32 to vector<8x64xi32>
    %43 = arith.cmpi slt, %16, %42 : vector<8x64xi32>
    %c-224_i32 = arith.constant -224 : i32
    %44 = vector.broadcast %c-224_i32 : i32 to vector<8x64xi32>
    %45 = arith.cmpi sge, %16, %44 : vector<8x64xi32>
    %46 = arith.andi %43, %45 : vector<8x64xi1>
    %47 = arith.select %46, %41, %14 : vector<8x64xi1>, vector<8x64xf32>
    %48 = arith.select %46, %39, %15 : vector<8x64xi1>, vector<8x64xf32>
    %cst_21 = arith.constant dense<0.000000e+00> : vector<8x256xf32>
    %49 = tpu.matmul %47, %13, %cst_21 {dimension_numbers = #tpu.dot_dimension_numbers<[1], [0], [0], [1], [0, 0, 1, 1], [], []>} : vector<8x64xf32>, vector<64x256xf32>, vector<8x256xf32> -> vector<8x256xf32>
    %50 = vector.extract_strided_slice %12 {offsets = [8, 0], sizes = [8, 256], strides = [1, 1]} : vector<64x256xf32> to vector<8x256xf32>
    %51 = arith.addf %49, %50 : vector<8x256xf32>
    %52 = math.tanh %51 : vector<8x256xf32>
    %53 = vector.extract_strided_slice %52 {offsets = [0, 0], sizes = [8, 64], strides = [1, 1]} : vector<8x256xf32> to vector<8x64xf32>
    %cst_22 = arith.constant 1.000000e+00 : f32
    %54 = vector.broadcast %cst_22 : f32 to vector<8x64xf32>
    %55 = arith.addf %54, %53 : vector<8x64xf32>
    %cst_23 = arith.constant 5.000000e-01 : f32
    %56 = vector.broadcast %cst_23 : f32 to vector<8x64xf32>
    %57 = arith.mulf %56, %55 : vector<8x64xf32>
    %58 = vector.extract_strided_slice %52 {offsets = [0, 64], sizes = [8, 64], strides = [1, 1]} : vector<8x256xf32> to vector<8x64xf32>
    %cst_24 = arith.constant 1.000000e+00 : f32
    %59 = vector.broadcast %cst_24 : f32 to vector<8x64xf32>
    %60 = arith.addf %59, %58 : vector<8x64xf32>
    %cst_25 = arith.constant 5.000000e-01 : f32
    %61 = vector.broadcast %cst_25 : f32 to vector<8x64xf32>
    %62 = arith.mulf %61, %60 : vector<8x64xf32>
    %63 = vector.extract_strided_slice %52 {offsets = [0, 128], sizes = [8, 64], strides = [1, 1]} : vector<8x256xf32> to vector<8x64xf32>
    %64 = vector.extract_strided_slice %52 {offsets = [0, 192], sizes = [8, 64], strides = [1, 1]} : vector<8x256xf32> to vector<8x64xf32>
    %cst_26 = arith.constant 1.000000e+00 : f32
    %65 = vector.broadcast %cst_26 : f32 to vector<8x64xf32>
    %66 = arith.addf %65, %64 : vector<8x64xf32>
    %cst_27 = arith.constant 5.000000e-01 : f32
    %67 = vector.broadcast %cst_27 : f32 to vector<8x64xf32>
    %68 = arith.mulf %67, %66 : vector<8x64xf32>
    %69 = arith.mulf %62, %48 : vector<8x64xf32>
    %70 = arith.mulf %57, %63 : vector<8x64xf32>
    %71 = arith.addf %69, %70 : vector<8x64xf32>
    %72 = math.tanh %71 : vector<8x64xf32>
    %73 = arith.mulf %68, %72 : vector<8x64xf32>
    %cst_28 = arith.constant dense<0.000000e+00> : vector<8x256xf32>
    %74 = tpu.matmul %73, %13, %cst_28 {dimension_numbers = #tpu.dot_dimension_numbers<[1], [0], [0], [1], [0, 0, 1, 1], [], []>} : vector<8x64xf32>, vector<64x256xf32>, vector<8x256xf32> -> vector<8x256xf32>
    %75 = vector.extract_strided_slice %12 {offsets = [16, 0], sizes = [8, 256], strides = [1, 1]} : vector<64x256xf32> to vector<8x256xf32>
    %76 = arith.addf %74, %75 : vector<8x256xf32>
    %77 = math.tanh %76 : vector<8x256xf32>
    %78 = vector.extract_strided_slice %77 {offsets = [0, 0], sizes = [8, 64], strides = [1, 1]} : vector<8x256xf32> to vector<8x64xf32>
    %cst_29 = arith.constant 1.000000e+00 : f32
    %79 = vector.broadcast %cst_29 : f32 to vector<8x64xf32>
    %80 = arith.addf %79, %78 : vector<8x64xf32>
    %cst_30 = arith.constant 5.000000e-01 : f32
    %81 = vector.broadcast %cst_30 : f32 to vector<8x64xf32>
    %82 = arith.mulf %81, %80 : vector<8x64xf32>
    %83 = vector.extract_strided_slice %77 {offsets = [0, 64], sizes = [8, 64], strides = [1, 1]} : vector<8x256xf32> to vector<8x64xf32>
    %cst_31 = arith.constant 1.000000e+00 : f32
    %84 = vector.broadcast %cst_31 : f32 to vector<8x64xf32>
    %85 = arith.addf %84, %83 : vector<8x64xf32>
    %cst_32 = arith.constant 5.000000e-01 : f32
    %86 = vector.broadcast %cst_32 : f32 to vector<8x64xf32>
    %87 = arith.mulf %86, %85 : vector<8x64xf32>
    %88 = vector.extract_strided_slice %77 {offsets = [0, 128], sizes = [8, 64], strides = [1, 1]} : vector<8x256xf32> to vector<8x64xf32>
    %89 = vector.extract_strided_slice %77 {offsets = [0, 192], sizes = [8, 64], strides = [1, 1]} : vector<8x256xf32> to vector<8x64xf32>
    %cst_33 = arith.constant 1.000000e+00 : f32
    %90 = vector.broadcast %cst_33 : f32 to vector<8x64xf32>
    %91 = arith.addf %90, %89 : vector<8x64xf32>
    %cst_34 = arith.constant 5.000000e-01 : f32
    %92 = vector.broadcast %cst_34 : f32 to vector<8x64xf32>
    %93 = arith.mulf %92, %91 : vector<8x64xf32>
    %94 = arith.mulf %87, %71 : vector<8x64xf32>
    %95 = arith.mulf %82, %88 : vector<8x64xf32>
    %96 = arith.addf %94, %95 : vector<8x64xf32>
    %97 = math.tanh %96 : vector<8x64xf32>
    %98 = arith.mulf %93, %97 : vector<8x64xf32>
    %cst_35 = arith.constant dense<0.000000e+00> : vector<8x256xf32>
    %99 = tpu.matmul %98, %13, %cst_35 {dimension_numbers = #tpu.dot_dimension_numbers<[1], [0], [0], [1], [0, 0, 1, 1], [], []>} : vector<8x64xf32>, vector<64x256xf32>, vector<8x256xf32> -> vector<8x256xf32>
    %100 = vector.extract_strided_slice %12 {offsets = [24, 0], sizes = [8, 256], strides = [1, 1]} : vector<64x256xf32> to vector<8x256xf32>
    %101 = arith.addf %99, %100 : vector<8x256xf32>
    %102 = math.tanh %101 : vector<8x256xf32>
    %103 = vector.extract_strided_slice %102 {offsets = [0, 0], sizes = [8, 64], strides = [1, 1]} : vector<8x256xf32> to vector<8x64xf32>
    %cst_36 = arith.constant 1.000000e+00 : f32
    %104 = vector.broadcast %cst_36 : f32 to vector<8x64xf32>
    %105 = arith.addf %104, %103 : vector<8x64xf32>
    %cst_37 = arith.constant 5.000000e-01 : f32
    %106 = vector.broadcast %cst_37 : f32 to vector<8x64xf32>
    %107 = arith.mulf %106, %105 : vector<8x64xf32>
    %108 = vector.extract_strided_slice %102 {offsets = [0, 64], sizes = [8, 64], strides = [1, 1]} : vector<8x256xf32> to vector<8x64xf32>
    %cst_38 = arith.constant 1.000000e+00 : f32
    %109 = vector.broadcast %cst_38 : f32 to vector<8x64xf32>
    %110 = arith.addf %109, %108 : vector<8x64xf32>
    %cst_39 = arith.constant 5.000000e-01 : f32
    %111 = vector.broadcast %cst_39 : f32 to vector<8x64xf32>
    %112 = arith.mulf %111, %110 : vector<8x64xf32>
    %113 = vector.extract_strided_slice %102 {offsets = [0, 128], sizes = [8, 64], strides = [1, 1]} : vector<8x256xf32> to vector<8x64xf32>
    %114 = vector.extract_strided_slice %102 {offsets = [0, 192], sizes = [8, 64], strides = [1, 1]} : vector<8x256xf32> to vector<8x64xf32>
    %cst_40 = arith.constant 1.000000e+00 : f32
    %115 = vector.broadcast %cst_40 : f32 to vector<8x64xf32>
    %116 = arith.addf %115, %114 : vector<8x64xf32>
    %cst_41 = arith.constant 5.000000e-01 : f32
    %117 = vector.broadcast %cst_41 : f32 to vector<8x64xf32>
    %118 = arith.mulf %117, %116 : vector<8x64xf32>
    %119 = arith.mulf %112, %96 : vector<8x64xf32>
    %120 = arith.mulf %107, %113 : vector<8x64xf32>
    %121 = arith.addf %119, %120 : vector<8x64xf32>
    %122 = math.tanh %121 : vector<8x64xf32>
    %123 = arith.mulf %118, %122 : vector<8x64xf32>
    %cst_42 = arith.constant dense<0.000000e+00> : vector<8x256xf32>
    %124 = tpu.matmul %123, %13, %cst_42 {dimension_numbers = #tpu.dot_dimension_numbers<[1], [0], [0], [1], [0, 0, 1, 1], [], []>} : vector<8x64xf32>, vector<64x256xf32>, vector<8x256xf32> -> vector<8x256xf32>
    %125 = vector.extract_strided_slice %12 {offsets = [32, 0], sizes = [8, 256], strides = [1, 1]} : vector<64x256xf32> to vector<8x256xf32>
    %126 = arith.addf %124, %125 : vector<8x256xf32>
    %127 = math.tanh %126 : vector<8x256xf32>
    %128 = vector.extract_strided_slice %127 {offsets = [0, 0], sizes = [8, 64], strides = [1, 1]} : vector<8x256xf32> to vector<8x64xf32>
    %cst_43 = arith.constant 1.000000e+00 : f32
    %129 = vector.broadcast %cst_43 : f32 to vector<8x64xf32>
    %130 = arith.addf %129, %128 : vector<8x64xf32>
    %cst_44 = arith.constant 5.000000e-01 : f32
    %131 = vector.broadcast %cst_44 : f32 to vector<8x64xf32>
    %132 = arith.mulf %131, %130 : vector<8x64xf32>
    %133 = vector.extract_strided_slice %127 {offsets = [0, 64], sizes = [8, 64], strides = [1, 1]} : vector<8x256xf32> to vector<8x64xf32>
    %cst_45 = arith.constant 1.000000e+00 : f32
    %134 = vector.broadcast %cst_45 : f32 to vector<8x64xf32>
    %135 = arith.addf %134, %133 : vector<8x64xf32>
    %cst_46 = arith.constant 5.000000e-01 : f32
    %136 = vector.broadcast %cst_46 : f32 to vector<8x64xf32>
    %137 = arith.mulf %136, %135 : vector<8x64xf32>
    %138 = vector.extract_strided_slice %127 {offsets = [0, 128], sizes = [8, 64], strides = [1, 1]} : vector<8x256xf32> to vector<8x64xf32>
    %139 = vector.extract_strided_slice %127 {offsets = [0, 192], sizes = [8, 64], strides = [1, 1]} : vector<8x256xf32> to vector<8x64xf32>
    %cst_47 = arith.constant 1.000000e+00 : f32
    %140 = vector.broadcast %cst_47 : f32 to vector<8x64xf32>
    %141 = arith.addf %140, %139 : vector<8x64xf32>
    %cst_48 = arith.constant 5.000000e-01 : f32
    %142 = vector.broadcast %cst_48 : f32 to vector<8x64xf32>
    %143 = arith.mulf %142, %141 : vector<8x64xf32>
    %144 = arith.mulf %137, %121 : vector<8x64xf32>
    %145 = arith.mulf %132, %138 : vector<8x64xf32>
    %146 = arith.addf %144, %145 : vector<8x64xf32>
    %147 = math.tanh %146 : vector<8x64xf32>
    %148 = arith.mulf %143, %147 : vector<8x64xf32>
    %cst_49 = arith.constant dense<0.000000e+00> : vector<8x256xf32>
    %149 = tpu.matmul %148, %13, %cst_49 {dimension_numbers = #tpu.dot_dimension_numbers<[1], [0], [0], [1], [0, 0, 1, 1], [], []>} : vector<8x64xf32>, vector<64x256xf32>, vector<8x256xf32> -> vector<8x256xf32>
    %150 = vector.extract_strided_slice %12 {offsets = [40, 0], sizes = [8, 256], strides = [1, 1]} : vector<64x256xf32> to vector<8x256xf32>
    %151 = arith.addf %149, %150 : vector<8x256xf32>
    %152 = math.tanh %151 : vector<8x256xf32>
    %153 = vector.extract_strided_slice %152 {offsets = [0, 0], sizes = [8, 64], strides = [1, 1]} : vector<8x256xf32> to vector<8x64xf32>
    %cst_50 = arith.constant 1.000000e+00 : f32
    %154 = vector.broadcast %cst_50 : f32 to vector<8x64xf32>
    %155 = arith.addf %154, %153 : vector<8x64xf32>
    %cst_51 = arith.constant 5.000000e-01 : f32
    %156 = vector.broadcast %cst_51 : f32 to vector<8x64xf32>
    %157 = arith.mulf %156, %155 : vector<8x64xf32>
    %158 = vector.extract_strided_slice %152 {offsets = [0, 64], sizes = [8, 64], strides = [1, 1]} : vector<8x256xf32> to vector<8x64xf32>
    %cst_52 = arith.constant 1.000000e+00 : f32
    %159 = vector.broadcast %cst_52 : f32 to vector<8x64xf32>
    %160 = arith.addf %159, %158 : vector<8x64xf32>
    %cst_53 = arith.constant 5.000000e-01 : f32
    %161 = vector.broadcast %cst_53 : f32 to vector<8x64xf32>
    %162 = arith.mulf %161, %160 : vector<8x64xf32>
    %163 = vector.extract_strided_slice %152 {offsets = [0, 128], sizes = [8, 64], strides = [1, 1]} : vector<8x256xf32> to vector<8x64xf32>
    %164 = vector.extract_strided_slice %152 {offsets = [0, 192], sizes = [8, 64], strides = [1, 1]} : vector<8x256xf32> to vector<8x64xf32>
    %cst_54 = arith.constant 1.000000e+00 : f32
    %165 = vector.broadcast %cst_54 : f32 to vector<8x64xf32>
    %166 = arith.addf %165, %164 : vector<8x64xf32>
    %cst_55 = arith.constant 5.000000e-01 : f32
    %167 = vector.broadcast %cst_55 : f32 to vector<8x64xf32>
    %168 = arith.mulf %167, %166 : vector<8x64xf32>
    %169 = arith.mulf %162, %146 : vector<8x64xf32>
    %170 = arith.mulf %157, %163 : vector<8x64xf32>
    %171 = arith.addf %169, %170 : vector<8x64xf32>
    %172 = math.tanh %171 : vector<8x64xf32>
    %173 = arith.mulf %168, %172 : vector<8x64xf32>
    %cst_56 = arith.constant dense<0.000000e+00> : vector<8x256xf32>
    %174 = tpu.matmul %173, %13, %cst_56 {dimension_numbers = #tpu.dot_dimension_numbers<[1], [0], [0], [1], [0, 0, 1, 1], [], []>} : vector<8x64xf32>, vector<64x256xf32>, vector<8x256xf32> -> vector<8x256xf32>
    %175 = vector.extract_strided_slice %12 {offsets = [48, 0], sizes = [8, 256], strides = [1, 1]} : vector<64x256xf32> to vector<8x256xf32>
    %176 = arith.addf %174, %175 : vector<8x256xf32>
    %177 = math.tanh %176 : vector<8x256xf32>
    %178 = vector.extract_strided_slice %177 {offsets = [0, 0], sizes = [8, 64], strides = [1, 1]} : vector<8x256xf32> to vector<8x64xf32>
    %cst_57 = arith.constant 1.000000e+00 : f32
    %179 = vector.broadcast %cst_57 : f32 to vector<8x64xf32>
    %180 = arith.addf %179, %178 : vector<8x64xf32>
    %cst_58 = arith.constant 5.000000e-01 : f32
    %181 = vector.broadcast %cst_58 : f32 to vector<8x64xf32>
    %182 = arith.mulf %181, %180 : vector<8x64xf32>
    %183 = vector.extract_strided_slice %177 {offsets = [0, 64], sizes = [8, 64], strides = [1, 1]} : vector<8x256xf32> to vector<8x64xf32>
    %cst_59 = arith.constant 1.000000e+00 : f32
    %184 = vector.broadcast %cst_59 : f32 to vector<8x64xf32>
    %185 = arith.addf %184, %183 : vector<8x64xf32>
    %cst_60 = arith.constant 5.000000e-01 : f32
    %186 = vector.broadcast %cst_60 : f32 to vector<8x64xf32>
    %187 = arith.mulf %186, %185 : vector<8x64xf32>
    %188 = vector.extract_strided_slice %177 {offsets = [0, 128], sizes = [8, 64], strides = [1, 1]} : vector<8x256xf32> to vector<8x64xf32>
    %189 = vector.extract_strided_slice %177 {offsets = [0, 192], sizes = [8, 64], strides = [1, 1]} : vector<8x256xf32> to vector<8x64xf32>
    %cst_61 = arith.constant 1.000000e+00 : f32
    %190 = vector.broadcast %cst_61 : f32 to vector<8x64xf32>
    %191 = arith.addf %190, %189 : vector<8x64xf32>
    %cst_62 = arith.constant 5.000000e-01 : f32
    %192 = vector.broadcast %cst_62 : f32 to vector<8x64xf32>
    %193 = arith.mulf %192, %191 : vector<8x64xf32>
    %194 = arith.mulf %187, %171 : vector<8x64xf32>
    %195 = arith.mulf %182, %188 : vector<8x64xf32>
    %196 = arith.addf %194, %195 : vector<8x64xf32>
    %197 = math.tanh %196 : vector<8x64xf32>
    %198 = arith.mulf %193, %197 : vector<8x64xf32>
    %cst_63 = arith.constant dense<0.000000e+00> : vector<8x256xf32>
    %199 = tpu.matmul %198, %13, %cst_63 {dimension_numbers = #tpu.dot_dimension_numbers<[1], [0], [0], [1], [0, 0, 1, 1], [], []>} : vector<8x64xf32>, vector<64x256xf32>, vector<8x256xf32> -> vector<8x256xf32>
    %200 = vector.extract_strided_slice %12 {offsets = [56, 0], sizes = [8, 256], strides = [1, 1]} : vector<64x256xf32> to vector<8x256xf32>
    %201 = arith.addf %199, %200 : vector<8x256xf32>
    %202 = math.tanh %201 : vector<8x256xf32>
    %203 = vector.extract_strided_slice %202 {offsets = [0, 0], sizes = [8, 64], strides = [1, 1]} : vector<8x256xf32> to vector<8x64xf32>
    %cst_64 = arith.constant 1.000000e+00 : f32
    %204 = vector.broadcast %cst_64 : f32 to vector<8x64xf32>
    %205 = arith.addf %204, %203 : vector<8x64xf32>
    %cst_65 = arith.constant 5.000000e-01 : f32
    %206 = vector.broadcast %cst_65 : f32 to vector<8x64xf32>
    %207 = arith.mulf %206, %205 : vector<8x64xf32>
    %208 = vector.extract_strided_slice %202 {offsets = [0, 64], sizes = [8, 64], strides = [1, 1]} : vector<8x256xf32> to vector<8x64xf32>
    %cst_66 = arith.constant 1.000000e+00 : f32
    %209 = vector.broadcast %cst_66 : f32 to vector<8x64xf32>
    %210 = arith.addf %209, %208 : vector<8x64xf32>
    %cst_67 = arith.constant 5.000000e-01 : f32
    %211 = vector.broadcast %cst_67 : f32 to vector<8x64xf32>
    %212 = arith.mulf %211, %210 : vector<8x64xf32>
    %213 = vector.extract_strided_slice %202 {offsets = [0, 128], sizes = [8, 64], strides = [1, 1]} : vector<8x256xf32> to vector<8x64xf32>
    %214 = vector.extract_strided_slice %202 {offsets = [0, 192], sizes = [8, 64], strides = [1, 1]} : vector<8x256xf32> to vector<8x64xf32>
    %cst_68 = arith.constant 1.000000e+00 : f32
    %215 = vector.broadcast %cst_68 : f32 to vector<8x64xf32>
    %216 = arith.addf %215, %214 : vector<8x64xf32>
    %cst_69 = arith.constant 5.000000e-01 : f32
    %217 = vector.broadcast %cst_69 : f32 to vector<8x64xf32>
    %218 = arith.mulf %217, %216 : vector<8x64xf32>
    %219 = arith.mulf %212, %196 : vector<8x64xf32>
    %220 = arith.mulf %207, %213 : vector<8x64xf32>
    %221 = arith.addf %219, %220 : vector<8x64xf32>
    %222 = math.tanh %221 : vector<8x64xf32>
    %223 = arith.mulf %218, %222 : vector<8x64xf32>
    %cst_70 = arith.constant dense<0.000000e+00> : vector<8x256xf32>
    %224 = tpu.matmul %223, %13, %cst_70 {dimension_numbers = #tpu.dot_dimension_numbers<[1], [0], [0], [1], [0, 0, 1, 1], [], []>} : vector<8x64xf32>, vector<64x256xf32>, vector<8x256xf32> -> vector<8x256xf32>
    %225 = vector.extract_strided_slice %12 {offsets = [56, 0], sizes = [8, 256], strides = [1, 1]} : vector<64x256xf32> to vector<8x256xf32>
    %226 = arith.addf %224, %225 : vector<8x256xf32>
    %227 = math.tanh %226 : vector<8x256xf32>
    %228 = vector.extract_strided_slice %227 {offsets = [0, 0], sizes = [8, 64], strides = [1, 1]} : vector<8x256xf32> to vector<8x64xf32>
    %cst_71 = arith.constant 1.000000e+00 : f32
    %229 = vector.broadcast %cst_71 : f32 to vector<8x64xf32>
    %230 = arith.addf %229, %228 : vector<8x64xf32>
    %cst_72 = arith.constant 5.000000e-01 : f32
    %231 = vector.broadcast %cst_72 : f32 to vector<8x64xf32>
    %232 = arith.mulf %231, %230 : vector<8x64xf32>
    %233 = vector.extract_strided_slice %227 {offsets = [0, 64], sizes = [8, 64], strides = [1, 1]} : vector<8x256xf32> to vector<8x64xf32>
    %cst_73 = arith.constant 1.000000e+00 : f32
    %234 = vector.broadcast %cst_73 : f32 to vector<8x64xf32>
    %235 = arith.addf %234, %233 : vector<8x64xf32>
    %cst_74 = arith.constant 5.000000e-01 : f32
    %236 = vector.broadcast %cst_74 : f32 to vector<8x64xf32>
    %237 = arith.mulf %236, %235 : vector<8x64xf32>
    %238 = vector.extract_strided_slice %227 {offsets = [0, 128], sizes = [8, 64], strides = [1, 1]} : vector<8x256xf32> to vector<8x64xf32>
    %239 = vector.extract_strided_slice %227 {offsets = [0, 192], sizes = [8, 64], strides = [1, 1]} : vector<8x256xf32> to vector<8x64xf32>
    %cst_75 = arith.constant 1.000000e+00 : f32
    %240 = vector.broadcast %cst_75 : f32 to vector<8x64xf32>
    %241 = arith.addf %240, %239 : vector<8x64xf32>
    %cst_76 = arith.constant 5.000000e-01 : f32
    %242 = vector.broadcast %cst_76 : f32 to vector<8x64xf32>
    %243 = arith.mulf %242, %241 : vector<8x64xf32>
    %244 = arith.mulf %237, %221 : vector<8x64xf32>
    %245 = arith.mulf %232, %238 : vector<8x64xf32>
    %246 = arith.addf %244, %245 : vector<8x64xf32>
    %247 = math.tanh %246 : vector<8x64xf32>
    %248 = arith.mulf %243, %247 : vector<8x64xf32>
    %c288_i32 = arith.constant 288 : i32
    %249 = vector.broadcast %c288_i32 : i32 to vector<8x64xi32>
    %250 = arith.cmpi slt, %16, %249 : vector<8x64xi32>
    %c32_i32_77 = arith.constant 32 : i32
    %251 = vector.broadcast %c32_i32_77 : i32 to vector<8x64xi32>
    %252 = arith.cmpi sge, %16, %251 : vector<8x64xi32>
    %253 = arith.andi %250, %252 : vector<8x64xi1>
    %254 = arith.select %253, %248, %223 : vector<8x64xi1>, vector<8x64xf32>
    %255 = arith.select %253, %246, %221 : vector<8x64xi1>, vector<8x64xf32>
    %256 = tpu.concatenate %73, %98, %123, %148, %173, %198, %223, %254 in 0 : vector<8x64xf32>, vector<8x64xf32>, vector<8x64xf32>, vector<8x64xf32>, vector<8x64xf32>, vector<8x64xf32>, vector<8x64xf32>, vector<8x64xf32> -> vector<64x64xf32>
    %c0_78 = arith.constant 0 : index
    %c0_79 = arith.constant 0 : index
    %257 = vector.load %arg7[%c0_78, %c0_79] : memref<64x128xf32, #tpu.memory_space<vmem>>, vector<64x128xf32>
    %cst_80 = arith.constant dense<0.000000e+00> : vector<64x128xf32>
    %258 = tpu.matmul %256, %257, %cst_80 {dimension_numbers = #tpu.dot_dimension_numbers<[1], [0], [0], [1], [0, 0, 1, 1], [], []>} : vector<64x64xf32>, vector<64x128xf32>, vector<64x128xf32> -> vector<64x128xf32>
    %c0_81 = arith.constant 0 : index
    %c0_82 = arith.constant 0 : index
    %259 = vector.load %arg8[%c0_81, %c0_82] : memref<1x128xf32, #tpu.memory_space<vmem>>, vector<1x128xf32>
    %260 = vector.broadcast %259 : vector<1x128xf32> to vector<64x128xf32>
    %261 = arith.addf %258, %260 : vector<64x128xf32>
    %c0_83 = arith.constant 0 : index
    %c0_84 = arith.constant 0 : index
    %262 = vector.load %arg9[%c0_83, %c0_84] : memref<64x128xf32, #tpu.memory_space<vmem>>, vector<64x128xf32>
    tpu.vector_store %arg9[%c0_83, %c0_84], %261 {strides = array<i32>} : memref<64x128xf32, #tpu.memory_space<vmem>>, vector<64x128xf32>,
    %c0_85 = arith.constant 0 : index
    %c0_86 = arith.constant 0 : index
    %263 = vector.load %arg10[%c0_85, %c0_86] : memref<8x64xf32, #tpu.memory_space<vmem>>, vector<8x64xf32>
    tpu.vector_store %arg10[%c0_85, %c0_86], %254 {strides = array<i32>} : memref<8x64xf32, #tpu.memory_space<vmem>>, vector<8x64xf32>,
    %c0_87 = arith.constant 0 : index
    %c0_88 = arith.constant 0 : index
    %264 = vector.load %arg11[%c0_87, %c0_88] : memref<8x64xf32, #tpu.memory_space<vmem>>, vector<8x64xf32>
    tpu.vector_store %arg11[%c0_87, %c0_88], %255 {strides = array<i32>} : memref<8x64xf32, #tpu.memory_space<vmem>>, vector<8x64xf32>,
    return
  }
}

</mosaic_0001>

<bundles_post_ra>
// kernel: tpu_custom_call.1
= control target key start
LH: loop header
LB: loop body
LE: loop exit
PB: predicated region body
PF: predicated region fallthrough
CT: control target
= control target key end

     0   :  { %17 = vsyncpa [#allocation3], 0  ;;  %s2521_s0 = inlined_call_operand.vmem [shape: s32[64,1], index: 0, kind: input, shape index: {}]   ;;  %s2522_s1 = inlined_call_operand.vmem [shape: f32[128,32], index: 1, kind: input, shape index: {}]   ;;  %s2523_s2 = inlined_call_operand.vmem [shape: f32[8,64], index: 2, kind: input, shape index: {}]   ;;  %s2524_s3 = inlined_call_operand.vmem [shape: f32[8,64], index: 3, kind: input, shape index: {}]   ;;  %s2525_s4 = inlined_call_operand.vmem [shape: f32[32,256], index: 4, kind: input, shape index: {}]   ;;  %s2526_s5 = inlined_call_operand.vmem [shape: f32[64,256], index: 5, kind: input, shape index: {}]   ;;  %s2527_s6 = inlined_call_operand.vmem [shape: f32[1,256], index: 6, kind: input, shape index: {}]   ;;  %s2528_s7 = inlined_call_operand.hbm [shape: f32[64,128], index: 7, kind: input, shape index: {}]   ;;  %s2529_s8 = inlined_call_operand.vmem [shape: f32[1,128], index: 8, kind: input, shape index: {}]   ;;  %s2530_s9 = inlined_call_operand.hbm [shape: f32[64,128], index: 9, kind: output, shape index: {0}]   ;;  %s2531_s10 = inlined_call_operand.hbm [shape: f32[8,64], index: 10, kind: output, shape index: {1}]   ;;  %s2532_s11 = inlined_call_operand.hbm [shape: f32[8,64], index: 11, kind: output, shape index: {2}]  }
   0x1   :  { %18 = vsyncpa [#allocation4], 0 }
   0x2   :  { %19 = vsyncpa [#allocation7], 0  ;;  %s1988_s17 = smov [#allocation2]   ;;  %s1894_s21 = scalar_lea.hbm %s2528_s7, 1024 }
   0x3   :  { %s39_s18 = sshll.u32 %s1988_s17, 4  ;;  %p1895_p0 = scmp.ne.s32.totalorder %s2528_s7, %s1894_s21  ;;  %s40_s18 = int_to_ptr.vmem [resolvable:$true] %s39_s18 }
   0x4   :  { %p1898_p1 = scmp.lt.u32.totalorder %s1894_s21, %s2528_s7 }
   0x6   :  { %p1900_p2 = pnand %p1898_p1, %p1895_p0 }
   0x8   :  { %1903 = shalt.err (!%p1900_p2)
}
   0x9   :  { %s1904_s26 = scalar_lea.vmem %s40_s18, 1024  ;;  %p1909_p4 = scmp.lt.s32.totalorder %s40_s18, %s40_s18 }
   0xa   :  { %p1905_p3 = scmp.ne.s32.totalorder %s40_s18, %s1904_s26  ;;  %p1910_p5 = scmp.lt.s32.totalorder %s1904_s26, %s1904_s26 }
   0xc   :  { %p1911_p6 = por %p1910_p5, %p1909_p4 }
   0xe   :  { %p1912_p7 = pnand %p1911_p6, %p1905_p3 }
  0x10   :  { %1915 = shalt.err (!%p1912_p7)
}
  0x11   :  { %s1989_s27 = smov 128   ;;  %s1990_s28 = smov 8  }
  0x12   :  { %45 = dma.hbm_to_vmem [thread:$0]  %s2528_s7, 1024, %s40_s18, [#allocation3], %s1989_s27, %s1989_s27, %s1990_s28  }
  0x13   :  { %1982 = dma.done.wait [#allocation3], 1024  }
  0x14   :  { %1983 = vsyncadd [#allocation3], 4294966272  ;;  %v1991_v0 = vmov 0   ;;  %v55_v1 = vld [vmem:[%s2521_s0 + $0x10] sm:$0xff]  ;;  %v53_v2 = vld [vmem:[%s2521_s0] sm:$0xff]  ;;  %v51_v45 = vlaneseq  ;;  %v1992_v49 = vmov 1.0  }
  0x15   :  { %1839 = vset.pattern.permute.xlu1 %v1991_v0  ;;  %1838 = vset.pattern.permute.xlu0 %v1991_v0  ;;  %v56_v3 = vld [vmem:[%s2521_s0 + $0x18] sm:$0xff]  ;;  %v54_v4 = vld [vmem:[%s2521_s0 + $0x8] sm:$0xff]  ;;  %v109_v5 = vld [vmem:[%s2522_s1] sm:$0xff]  ;;  %v1993_v56 = vmov 0.0   ;;  %s1994_s23 = smov 64   ;;  %vm250_vm8 = vcmask 261120  }
  0x16   :  { %68 = vperm.xlu1 %1839, %v55_v1   ;;  %62 = vperm.xlu0 %1838, %v53_v2   ;;  %v110_v6 = vld [vmem:[%s2522_s1 + $0x8] sm:$0xff]  ;;  %v111_v7 = vld [vmem:[%s2522_s1 + $0x10] sm:$0xff]  ;;  %v112_v8 = vld [vmem:[%s2522_s1 + $0x18] sm:$0xff]  ;;  %v2170_v46 = vand.u32 127, %v51_v45  ;;  %vm406_vm9 = vcmask 523264  }
  0x17   :  { %v1596_v9 = vpack.c.bf16 %v110_v6, %v109_v5  ;;  %v1600_v10 = vpack.c.bf16 %v112_v8, %v111_v7  ;;  %v113_v11 = vld [vmem:[%s2522_s1 + $0x20] sm:$0xff]  ;;  %v114_v12 = vld [vmem:[%s2522_s1 + $0x28] sm:$0xff]  ;;  %v115_v16 = vld [vmem:[%s2522_s1 + $0x30] sm:$0xff]  ;;  %363 = vmatprep.mubr.f32.mxu1 %v1993_v56 }
  0x18   :  { %v58_v13 = vld [vmem:[%s2521_s0 + $0x28] sm:$0xff]  ;;  %v57_v14 = vld [vmem:[%s2521_s0 + $0x20] sm:$0xff]  ;;  %v1604_v15 = vpack.c.bf16 %v114_v12, %v113_v11  ;;  %v116_v17 = vld [vmem:[%s2522_s1 + $0x38] sm:$0xff]  ;;  %vm500_vm10 = vcmp.lt.s32.totalorder %v2170_v46, 32  ;;  %vm1244_vm11 = vcmp.ge.s32.totalorder %v2170_v46, 32 }
  0x19   :  { %1597 = vmatprep.subr.bf16.mxu0 %v1596_v9  ;;  %v60_v18 = vld [vmem:[%s2521_s0 + $0x38] sm:$0xff]  ;;  %v59_v19 = vld [vmem:[%s2521_s0 + $0x30] sm:$0xff]  ;;  %v1608_v20 = vpack.c.bf16 %v116_v17, %v115_v16  ;;  %v117_v21 = vld [vmem:[%s2522_s1 + $0x40] sm:$0xff] }
  0x1a   :  { %71 = vperm.xlu1 %1839, %v56_v3   ;;  %65 = vperm.xlu0 %1838, %v54_v4   ;;  %v118_v22 = vld [vmem:[%s2522_s1 + $0x48] sm:$0xff]  ;;  %v119_v24 = vld [vmem:[%s2522_s1 + $0x50] sm:$0xff]  ;;  %v120_v25 = vld [vmem:[%s2522_s1 + $0x58] sm:$0xff] }
  0x1b   :  { %1599 = vmatpush3.bf16.msra.mxu0 %v1596_v9  ;;  %v1612_v23 = vpack.c.bf16 %v118_v22, %v117_v21  ;;  %v231_v26 = vld [vmem:[%s2525_s4 + $0x8] sm:$0xff]  ;;  %v233_v27 = vld [vmem:[%s2525_s4 + $0x18] sm:$0xff]  ;;  %v230_v28 = vld [vmem:[%s2525_s4] sm:$0xff]  ;;  %v1616_v33 = vpack.c.bf16 %v120_v25, %v119_v24 }
  0x1c   :  { %1601 = vmatprep.subr.bf16.mxu0 %v1600_v10  ;;  %v1628_v29 = vpack.c.bf16 %v233_v27, %v231_v26  ;;  %v232_v30 = vld [vmem:[%s2525_s4 + $0x10] sm:$0xff]  ;;  %v235_v31 = vld [vmem:[%s2525_s4 + $0x28] sm:$0xff]  ;;  %v237_v32 = vld [vmem:[%s2525_s4 + $0x38] sm:$0xff] }
  0x1d   :  { %v121_v34 = vld [vmem:[%s2522_s1 + $0x60] sm:$0xff]  ;;  %v1630_v35 = vpack.c.bf16 %v232_v30, %v230_v28  ;;  %v122_v36 = vld [vmem:[%s2522_s1 + $0x68] sm:$0xff]  ;;  %v1632_v37 = vpack.c.bf16 %v237_v32, %v235_v31  ;;  %v236_v39 = vld [vmem:[%s2525_s4 + $0x30] sm:$0xff] }
  0x1e   :  { %77 = vperm.xlu1 %1839, %v58_v13   ;;  %74 = vperm.xlu0 %1838, %v57_v14   ;;  %v234_v38 = vld [vmem:[%s2525_s4 + $0x20] sm:$0xff]  ;;  %v1620_v40 = vpack.c.bf16 %v122_v36, %v121_v34  ;;  %v123_v42 = vld [vmem:[%s2522_s1 + $0x70] sm:$0xff]  ;;  %v124_v43 = vld [vmem:[%s2522_s1 + $0x78] sm:$0xff] }
  0x1f   :  { %1603 = vmatpush3.bf16.msra.mxu0 %v1600_v10  ;;  %1796 = vmatprep.subr.bf16.mxu1 %v1628_v29  ;;  %v1634_v41 = vpack.c.bf16 %v236_v39, %v234_v38  ;;  %v1624_v44 = vpack.c.bf16 %v124_v43, %v123_v42  ;;  %v389_v57 = vld [vmem:[%s2526_s5 + $0x8] sm:$0xff]  ;;  %v391_v58 = vld [vmem:[%s2526_s5 + $0x18] sm:$0xff]  ;;  %v2195_v60 = vld [vmem:[%s2524_s3] sm:$0xff] }
  0x20   :  { %1605 = vmatprep.subr.bf16.mxu0 %v1604_v15  ;;  %1798 = vmatpush1.bf16.msra.mxu1 %v1630_v35  ;;  %v2188_v59 = vpack.c.bf16 %v391_v58, %v389_v57  ;;  %v388_v61 = vld [vmem:[%s2526_s5] sm:$0xff]  ;;  %v390_v62 = vld [vmem:[%s2526_s5 + $0x10] sm:$0xff]  ;;  %v393_v63 = vld [vmem:[%s2526_s5 + $0x28] sm:$0xff] }
  0x21   :  { %1797 = vmatprep.subr.bf16.mxu1 %v1632_v37  ;;  %v395_v0 = vld [vmem:[%s2526_s5 + $0x38] sm:$0xff]  ;;  %v2211_v3 = vpack.c.bf16 %v390_v62, %v388_v61  ;;  %v392_v5 = vld [vmem:[%s2526_s5 + $0x20] sm:$0xff]  ;;  %v394_v6 = vld [vmem:[%s2526_s5 + $0x30] sm:$0xff] }
  0x22   :  { %83 = vperm.xlu1 %1839, %v60_v18   ;;  %80 = vperm.xlu0 %1838, %v59_v19   ;;  %v2214_v4 = vpack.c.bf16 %v395_v0, %v393_v63  ;;  %v397_v7 = vld [vmem:[%s2526_s5 + $0x48] sm:$0xff]  ;;  %v399_v8 = vld [vmem:[%s2526_s5 + $0x58] sm:$0xff]  ;;  %v2231_v11 = vpack.c.bf16 %v394_v6, %v392_v5  ;;  %v396_v14 = vld [vmem:[%s2526_s5 + $0x40] sm:$0xff] }
  0x23   :  { %1607 = vmatpush3.bf16.msra.mxu0 %v1604_v15  ;;  %v2234_v12 = vpack.c.bf16 %v399_v8, %v397_v7  ;;  %v398_v15 = vld [vmem:[%s2526_s5 + $0x50] sm:$0xff]  ;;  %v401_v18 = vld [vmem:[%s2526_s5 + $0x68] sm:$0xff]  ;;  %v403_v19 = vld [vmem:[%s2526_s5 + $0x78] sm:$0xff] }
  0x24   :  { %1609 = vmatprep.subr.bf16.mxu0 %v1608_v20  ;;  %1799 = vmatpush1.bf16.msra.mxu1 %v1634_v41  ;;  %v2249_v17 = vpack.c.bf16 %v398_v15, %v396_v14  ;;  %v400_v21 = vld [vmem:[%s2526_s5 + $0x60] sm:$0xff]  ;;  %v402_v22 = vld [vmem:[%s2526_s5 + $0x70] sm:$0xff]  ;;  %v2268_v24 = vpack.c.bf16 %v403_v19, %v401_v18 }
  0x25   :  { %1637 = vmatprep.subr.bf16.mxu1 %v2188_v59  ;;  %v2272_v25 = vpack.c.bf16 %v402_v22, %v400_v21  ;;  %v404_v26 = vld [vmem:[%s2523_s2] sm:$0xff] }
  0x26   :  { %488 = vrot.lane.b32.xlu0 %v2195_v60, %s1994_s23 }
  0x27   :  { %1611 = vmatpush3.bf16.msra.mxu0 %v1608_v20 }
  0x28   :  { %1613 = vmatprep.subr.bf16.mxu0 %v1612_v23 }
  0x2b   :  { %1615 = vmatpush3.bf16.msra.mxu0 %v1612_v23 }
  0x2c   :  { %1617 = vmatprep.subr.bf16.mxu0 %v1616_v33 }
  0x2f   :  { %1619 = vmatpush3.bf16.msra.mxu0 %v1616_v33  ;;  %v241_v33 = vshrl.u32 %v51_v45, 7 }
  0x30   :  { %1621 = vmatprep.subr.bf16.mxu0 %v1620_v40 }
  0x31   :  { %v242_v36 = vsub.s32 0, %v241_v33  ;;  %v246_v38 = vsub.s32 1, %v241_v33 }
  0x33   :  { %1623 = vmatpush3.bf16.msra.mxu0 %v1620_v40 }
  0x34   :  { %1625 = vmatprep.subr.bf16.mxu0 %v1624_v44 }
  0x37   :  { %1627 = vmatpush3.bf16.msra.mxu0 %v1624_v44 }
  0x38   :  { %1629 = vmatprep.subr.bf16.mxu0 %v1628_v29 }
  0x95   :  { %v69_v47 = vpop.permute.xlu1 %68  ;;  %v63_v48 = vpop.permute.xlu0 %62 }
  0x96   :  { %vm85_vm0 = vcmp.eq.s32.totalorder %v63_v48, %v2170_v46  ;;  %vm87_vm1 = vcmp.eq.s32.totalorder %v69_v47, %v2170_v46 }
  0x97   :  { %1556 = vmatprep.mubr.msk.f32.mxu0 %vm85_vm0, %v1992_v49 }
  0x99   :  { %v72_v50 = vpop.permute.xlu1 %71  ;;  %v66_v51 = vpop.permute.xlu0 %65 }
  0x9a   :  { %vm86_vm2 = vcmp.eq.s32.totalorder %v66_v51, %v2170_v46  ;;  %vm88_vm3 = vcmp.eq.s32.totalorder %v72_v50, %v2170_v46 }
  0x9b   :  { %1557 = vmatmul.mubr.msk.f32.vlgmr.msra.gmra.mrb[0].mxu0 %vm86_vm2, %v1992_v49 }
  0x9c   :  { %1559 = vmatprep.mubr.msk.f32.mxu0 %vm87_vm1, %v1992_v49  ;;  %1631 = vmatpush1.bf16.msra.mxu0 %v1630_v35 }
  0x9d   :  { %v78_v52 = vpop.permute.xlu1 %77  ;;  %v75_v53 = vpop.permute.xlu0 %74  ;;  %1633 = vmatprep.subr.bf16.mxu0 %v1632_v37  ;;  %v238_v37 = vld [vmem:[%s2527_s6] sm:$0x3] }
  0x9e   :  { %vm89_vm4 = vcmp.eq.s32.totalorder %v75_v53, %v2170_v46  ;;  %vm90_vm5 = vcmp.eq.s32.totalorder %v78_v52, %v2170_v46  ;;  %v2312_v39 = vrot.slane %v238_v37, %v242_v36  ;;  %v2314_v40 = vrot.slane %v238_v37, %v246_v38 }
  0x9f   :  { %1560 = vmatmul.mubr.msk.f32.gmra.mrb[2].mxu0 %vm88_vm3, %v1992_v49 }
  0xa0   :  { %1562 = vmatprep.mubr.msk.f32.mxu0 %vm89_vm4, %v1992_v49  ;;  %1635 = vmatpush1.bf16.msra.mxu0 %v1634_v41 }
  0xa1   :  { %v81_v54 = vpop.permute.xlu0 %80  ;;  %v84_v55 = vpop.permute.xlu1 %83  ;;  %1749 = vmatprep.subr.bf16.mxu0 %v2188_v59 }
  0xa2   :  { %vm91_vm6 = vcmp.eq.s32.totalorder %v81_v54, %v2170_v46  ;;  %vm92_vm7 = vcmp.eq.s32.totalorder %v84_v55, %v2170_v46 }
  0xa3   :  { %1563 = vmatmul.mubr.msk.f32.gmra.mrb[4].mxu0 %vm90_vm5, %v1992_v49 }
  0xa4   :  { %1565 = vmatprep.mubr.msk.f32.mxu0 %vm91_vm6, %v1992_v49 }
  0xa5   :  { %v489_v55 = vpop.permute.xlu0 %488 }
  0xa7   :  { %1566 = vmatmul.mubr.msk.f32.gmra.mrb[6].mxu0 %vm92_vm7, %v1992_v49 }
  0xa8   :  { %339 = vmatprep.mubr.f32.mxu0 %v1993_v56 }
 0x16e   :  { %v1558_v1 = vpop.f32.mrb[0].mxu0 }
 0x16f   :  { %v191_v2 = vpop.f32.mrb[1].mxu0 }
 0x170   :  { %1458 = vmatmul.mubr.msk.f32.vlgmr.msra.gmra.mrb[8].mxu0 %vm250_vm8, %v191_v2 }
 0x171   :  { %345 = vmatprep.mubr.f32.mxu0 %v1993_v56  ;;  %1751 = vmatpush1.bf16.msra.mxu0 %v2211_v3 }
 0x172   :  { %v1561_v9 = vpop.f32.mrb[2].mxu0  ;;  %1753 = vmatprep.subr.bf16.mxu0 %v2214_v4 }
 0x173   :  { %v201_v10 = vpop.f32.mrb[3].mxu0 }
 0x174   :  { %1459 = vmatmul.mubr.msk.f32.gmra.mrb[10].mxu0 %vm250_vm8, %v1558_v1 }
 0x175   :  { %351 = vmatprep.mubr.f32.mxu0 %v1993_v56  ;;  %1755 = vmatpush1.bf16.msra.mxu0 %v2231_v11 }
 0x176   :  { %v1564_v13 = vpop.f32.mrb[4].mxu0  ;;  %1757 = vmatprep.subr.bf16.mxu0 %v2234_v12 }
 0x177   :  { %v211_v16 = vpop.f32.mrb[5].mxu0 }
 0x178   :  { %1460 = vmatmul.mubr.msk.f32.gmra.mrb[12].mxu0 %vm250_vm8, %v201_v10  ;;  %1462 = vmatmul.mubr.msk.f32.vlgmr.msra.gmra.mrb[0].mxu1 %vm250_vm8, %v211_v16 }
 0x179   :  { %1639 = vmatpush1.bf16.msra.mxu1 %v2211_v3  ;;  %357 = vmatprep.mubr.f32.mxu0 %v1993_v56 }
 0x17a   :  { %v1567_v20 = vpop.f32.mrb[6].mxu0  ;;  %369 = vmatprep.mubr.f32.mxu1 %v1993_v56  ;;  %1641 = vmatprep.subr.bf16.mxu1 %v2214_v4 }
 0x17b   :  { %v221_v23 = vpop.f32.mrb[7].mxu0  ;;  %1759 = vmatpush1.bf16.msra.mxu0 %v2249_v17 }
 0x17c   :  { %1461 = vmatmul.mubr.msk.f32.gmra.mrb[14].mxu0 %vm250_vm8, %v1561_v9  ;;  %1463 = vmatmul.mubr.msk.f32.gmra.mrb[2].mxu1 %vm250_vm8, %v1564_v13 }
 0x17d   :  { %1643 = vmatpush1.bf16.msra.mxu1 %v2231_v11  ;;  %375 = vmatprep.mubr.f32.mxu1 %v1993_v56 }
 0x17e   :  { %1645 = vmatprep.subr.bf16.mxu1 %v2234_v12  ;;  %1761 = vmatprep.subr.bf16.mxu0 %v2268_v24 }
 0x17f   :  { %1763 = vmatpush1.bf16.msra.mxu0 %v2272_v25  ;;  %1130 = vmatprep.mubr.f32.mxu0 %v1993_v56 }
 0x180   :  { %1464 = vmatmul.mubr.msk.f32.gmra.mrb[4].mxu1 %vm250_vm8, %v221_v23  ;;  %1765 = vmatprep.subr.bf16.mxu0 %v2188_v59 }
 0x181   :  { %1647 = vmatpush1.bf16.msra.mxu1 %v2249_v17  ;;  %381 = vmatprep.mubr.f32.mxu1 %v1993_v56 }
 0x182   :  { %1649 = vmatprep.subr.bf16.mxu1 %v2268_v24 }
 0x184   :  { %1465 = vmatmul.mubr.msk.f32.gmra.mrb[6].mxu1 %vm250_vm8, %v1567_v20 }
 0x185   :  { %1651 = vmatpush1.bf16.msra.mxu1 %v2272_v25  ;;  %474 = vmatprep.mubr.f32.mxu1 %v1993_v56 }
 0x186   :  { %1653 = vmatprep.subr.bf16.mxu1 %v2188_v59 }
 0x188   :  { %1466 = vmatmul.mubr.msk.f32.vlgmr.msra.gmra.mrb[8].mxu1 %vm406_vm9, %v404_v26 }
 0x189   :  { %1655 = vmatpush1.bf16.msra.mxu1 %v2211_v3  ;;  %580 = vmatprep.mubr.f32.mxu1 %v1993_v56 }
 0x18a   :  { %1657 = vmatprep.subr.bf16.mxu1 %v2214_v4 }
 0x18d   :  { %1659 = vmatpush1.bf16.msra.mxu1 %v2231_v11 }
 0x18e   :  { %1661 = vmatprep.subr.bf16.mxu1 %v2234_v12 }
 0x191   :  { %1663 = vmatpush1.bf16.msra.mxu1 %v2249_v17 }
 0x192   :  { %1665 = vmatprep.subr.bf16.mxu1 %v2268_v24 }
 0x195   :  { %1667 = vmatpush1.bf16.msra.mxu1 %v2272_v25 }
 0x196   :  { %1669 = vmatprep.subr.bf16.mxu1 %v2188_v59 }
 0x243   :  { %v341_v27 = vpop.f32.mrb[8].mxu0 }
 0x244   :  { %v343_v28 = vpop.f32.mrb[9].mxu0  ;;  %v342_v43 = vadd.f32 %v341_v27, %v2312_v39 }
 0x245   :  { %v344_v44 = vadd.f32 %v343_v28, %v2314_v40 }
 0x247   :  { %v347_v29 = vpop.f32.mrb[10].mxu0 }
 0x248   :  { %v349_v30 = vpop.f32.mrb[11].mxu0 }
 0x249   :  { %v350_v8 = vadd.f32 %v349_v30, %v2314_v40 }
 0x24b   :  { %v2300_v31 = vpop.f32.mrb[12].mxu0 }
 0x24c   :  { %v2302_v32 = vpop.f32.mrb[13].mxu0  ;;  %v354_v36 = vadd.f32 %v2300_v31, %v2312_v39 }
 0x24d   :  { %v356_v37 = vadd.f32 %v2302_v32, %v2314_v40 }
 0x24f   :  { %v2305_v34 = vpop.f32.mrb[14].mxu0 }
 0x250   :  { %v2307_v35 = vpop.f32.mrb[15].mxu0 }
 0x257   :  { %v2316_v41 = vpop.f32.mrb[6].mxu1 }
 0x258   :  { %v2318_v42 = vpop.f32.mrb[7].mxu1 }
 0x25b   :  { %v476_v45 = vpop.f32.mrb[8].mxu1 }
 0x25c   :  { %v477_v47 = vadd.f32 %v476_v45, %v342_v43  ;;  %v478_v48 = vpop.f32.mrb[9].mxu1 }
 0x25d   :  { %v479_v49 = vadd.f32 %v478_v48, %v344_v44 }
 0x25e   :  { %1840 = vtanh.f32 %v477_v47 }
 0x25f   :  { %1842 = vtanh.f32 %v479_v49 }
 0x268   :  { %v1841_v50 = vpop.eup %1840 }
 0x269   :  { %v483_v51 = vadd.f32 1.0, %v1841_v50  ;;  %v1843_v53 = vpop.eup %1842 }
 0x26a   :  { %v485_v62 = vadd.f32 1.0, %v1843_v53 }
 0x26b   :  { %v484_v52 = vmul.f32 0.5, %v483_v51 }
 0x26c   :  { %v486_v63 = vmul.f32 0.5, %v485_v62  ;;  %v362_v62 = vadd.f32 %v2307_v35, %v2314_v40 }
 0x26d   :  { %v492_v54 = vmul.f32 %v1843_v53, %v484_v52  ;;  %v491_v57 = vmul.f32 %v489_v55, %v484_v52 }
 0x26f   :  { %494 = vrot.lane.b32.xlu1 %v492_v54, %s1994_s23 }
 0x2e1   :  { %v495_v58 = vpop.permute.xlu1 %494 }
 0x2e2   :  { %v497_v61 = vadd.f32 %v495_v58, %v491_v57 }
 0x2e4   :  { %1844 = vtanh.f32 %v497_v61  ;;  %509 = vrot.lane.b32.xlu1 %v497_v61, %s1994_s23  ;;  %v360_v61 = vadd.f32 %v2305_v34, %v2312_v39 }
 0x2ee   :  { %v1845_v0 = vpop.eup %1844 }
 0x2ef   :  { %v499_v1 = vmul.f32 %v1845_v0, %v486_v63 }
 0x2f1   :  { %504 = vrot.lane.b32.xlu0 %v499_v1, %s1994_s23 }
 0x356   :  { %v510_v2 = vpop.permute.xlu1 %509 }
 0x357   :  { %v512_v5 = vsel %vm500_vm10, %v510_v2, %v2195_v60  ;;  %v348_v60 = vadd.f32 %v347_v29, %v2312_v39 }
 0x358   :  { %594 = vrot.lane.b32.xlu0 %v512_v5, %s1994_s23 }
 0x363   :  { %v505_v6 = vpop.permute.xlu0 %504 }
 0x364   :  { %v507_v7 = vsel %vm500_vm10, %v505_v6, %v404_v26 }
 0x365   :  { %1467 = vmatmul.mubr.msk.f32.vlgmr.msra.gmra.mrb[10].mxu1 %vm406_vm9, %v507_v7 }
 0x366   :  { %1671 = vmatpush1.bf16.msra.mxu1 %v2211_v3  ;;  %675 = vmatprep.mubr.f32.mxu1 %v1993_v56 }
 0x367   :  { %1673 = vmatprep.subr.bf16.mxu1 %v2214_v4 }
 0x36a   :  { %1675 = vmatpush1.bf16.msra.mxu1 %v2231_v11 }
 0x36b   :  { %1677 = vmatprep.subr.bf16.mxu1 %v2234_v12 }
 0x36e   :  { %1679 = vmatpush1.bf16.msra.mxu1 %v2249_v17 }
 0x36f   :  { %1681 = vmatprep.subr.bf16.mxu1 %v2268_v24 }
 0x372   :  { %1683 = vmatpush1.bf16.msra.mxu1 %v2272_v25 }
 0x373   :  { %1685 = vmatprep.subr.bf16.mxu1 %v2188_v59 }
 0x3ca   :  { %v595_v21 = vpop.permute.xlu0 %594 }
 0x438   :  { %v582_v9 = vpop.f32.mrb[10].mxu1 }
 0x439   :  { %v583_v10 = vadd.f32 %v582_v9, %v348_v60  ;;  %v584_v13 = vpop.f32.mrb[11].mxu1 }
 0x43a   :  { %v585_v14 = vadd.f32 %v584_v13, %v350_v8 }
 0x43b   :  { %1846 = vtanh.f32 %v583_v10 }
 0x43c   :  { %1848 = vtanh.f32 %v585_v14 }
 0x445   :  { %v1847_v15 = vpop.eup %1846 }
 0x446   :  { %v589_v16 = vadd.f32 1.0, %v1847_v15  ;;  %v1849_v19 = vpop.eup %1848 }
 0x447   :  { %v591_v27 = vadd.f32 1.0, %v1849_v19 }
 0x448   :  { %v590_v18 = vmul.f32 0.5, %v589_v16 }
 0x449   :  { %v592_v28 = vmul.f32 0.5, %v591_v27 }
 0x44a   :  { %v598_v20 = vmul.f32 %v1849_v19, %v590_v18  ;;  %v597_v22 = vmul.f32 %v595_v21, %v590_v18 }
 0x44c   :  { %600 = vrot.lane.b32.xlu1 %v598_v20, %s1994_s23 }
 0x4be   :  { %v601_v23 = vpop.permute.xlu1 %600 }
 0x4bf   :  { %v603_v26 = vadd.f32 %v601_v23, %v597_v22 }
 0x4c1   :  { %1850 = vtanh.f32 %v603_v26 }
 0x4cb   :  { %v1851_v29 = vpop.eup %1850 }
 0x4cc   :  { %v605_v30 = vmul.f32 %v1851_v29, %v592_v28 }
 0x4ce   :  { %607 = vrot.lane.b32.xlu0 %v605_v30, %s1994_s23 }
 0x540   :  { %v2342_v33 = vpop.permute.xlu0 %607 }
 0x541   :  { %1468 = vmatmul.mubr.msk.f32.vlgmr.msra.gmra.mrb[12].mxu1 %vm406_vm9, %v2342_v33 }
 0x542   :  { %1687 = vmatpush1.bf16.msra.mxu1 %v2211_v3  ;;  %766 = vmatprep.mubr.f32.mxu1 %v1993_v56 }
 0x543   :  { %1689 = vmatprep.subr.bf16.mxu1 %v2214_v4 }
 0x546   :  { %1691 = vmatpush1.bf16.msra.mxu1 %v2231_v11 }
 0x547   :  { %1693 = vmatprep.subr.bf16.mxu1 %v2234_v12 }
 0x54a   :  { %1695 = vmatpush1.bf16.msra.mxu1 %v2249_v17 }
 0x54b   :  { %1697 = vmatprep.subr.bf16.mxu1 %v2268_v24 }
 0x54e   :  { %1699 = vmatpush1.bf16.msra.mxu1 %v2272_v25 }
 0x54f   :  { %1701 = vmatprep.subr.bf16.mxu1 %v2188_v59 }
 0x614   :  { %v677_v38 = vpop.f32.mrb[12].mxu1 }
 0x615   :  { %v678_v43 = vadd.f32 %v677_v38, %v354_v36  ;;  %v679_v44 = vpop.f32.mrb[13].mxu1 }
 0x616   :  { %v680_v45 = vadd.f32 %v679_v44, %v356_v37 }
 0x617   :  { %1852 = vtanh.f32 %v678_v43 }
 0x618   :  { %1854 = vtanh.f32 %v680_v45 }
 0x621   :  { %v1853_v47 = vpop.eup %1852 }
 0x622   :  { %v684_v48 = vadd.f32 1.0, %v1853_v47  ;;  %v1855_v50 = vpop.eup %1854 }
 0x623   :  { %v686_v31 = vadd.f32 1.0, %v1855_v50 }
 0x624   :  { %v685_v49 = vmul.f32 0.5, %v684_v48 }
 0x625   :  { %v687_v55 = vmul.f32 0.5, %v686_v31 }
 0x626   :  { %v689_v51 = vmul.f32 %v1855_v50, %v685_v49  ;;  %v688_v52 = vmul.f32 %v685_v49, %v603_v26 }
 0x628   :  { %691 = vrot.lane.b32.xlu1 %v689_v51, %s1994_s23 }
 0x69a   :  { %v692_v53 = vpop.permute.xlu1 %691 }
 0x69b   :  { %v694_v54 = vadd.f32 %v692_v53, %v688_v52 }
 0x69d   :  { %1856 = vtanh.f32 %v694_v54 }
 0x6a7   :  { %v1857_v32 = vpop.eup %1856 }
 0x6a8   :  { %v696_v57 = vmul.f32 %v1857_v32, %v687_v55 }
 0x6aa   :  { %698 = vrot.lane.b32.xlu0 %v696_v57, %s1994_s23 }
 0x71c   :  { %v2361_v58 = vpop.permute.xlu0 %698 }
 0x71d   :  { %1469 = vmatmul.mubr.msk.f32.vlgmr.msra.gmra.mrb[14].mxu1 %vm406_vm9, %v2361_v58 }
 0x71e   :  { %1703 = vmatpush1.bf16.msra.mxu1 %v2211_v3  ;;  %857 = vmatprep.mubr.f32.mxu1 %v1993_v56 }
 0x71f   :  { %1705 = vmatprep.subr.bf16.mxu1 %v2214_v4 }
 0x722   :  { %1707 = vmatpush1.bf16.msra.mxu1 %v2231_v11 }
 0x723   :  { %1709 = vmatprep.subr.bf16.mxu1 %v2234_v12 }
 0x726   :  { %1711 = vmatpush1.bf16.msra.mxu1 %v2249_v17 }
 0x727   :  { %1713 = vmatprep.subr.bf16.mxu1 %v2268_v24 }
 0x72a   :  { %1715 = vmatpush1.bf16.msra.mxu1 %v2272_v25 }
 0x72b   :  { %1717 = vmatprep.subr.bf16.mxu1 %v2188_v59 }
 0x7f0   :  { %v768_v63 = vpop.f32.mrb[14].mxu1 }
 0x7f1   :  { %v769_v0 = vadd.f32 %v768_v63, %v360_v61  ;;  %v770_v1 = vpop.f32.mrb[15].mxu1 }
 0x7f2   :  { %v771_v2 = vadd.f32 %v770_v1, %v362_v62 }
 0x7f3   :  { %1858 = vtanh.f32 %v769_v0 }
 0x7f4   :  { %1860 = vtanh.f32 %v771_v2 }
 0x7fd   :  { %v1859_v5 = vpop.eup %1858 }
 0x7fe   :  { %v775_v6 = vadd.f32 1.0, %v1859_v5  ;;  %v1861_v60 = vpop.eup %1860 }
 0x7ff   :  { %v777_v34 = vadd.f32 1.0, %v1861_v60 }
 0x800   :  { %v776_v7 = vmul.f32 0.5, %v775_v6 }
 0x801   :  { %v778_v14 = vmul.f32 0.5, %v777_v34 }
 0x802   :  { %v780_v8 = vmul.f32 %v1861_v60, %v776_v7  ;;  %v779_v9 = vmul.f32 %v776_v7, %v694_v54 }
 0x804   :  { %782 = vrot.lane.b32.xlu1 %v780_v8, %s1994_s23 }
 0x876   :  { %v783_v10 = vpop.permute.xlu1 %782 }
 0x877   :  { %v785_v13 = vadd.f32 %v783_v10, %v779_v9 }
 0x879   :  { %1862 = vtanh.f32 %v785_v13 }
 0x883   :  { %v1863_v35 = vpop.eup %1862 }
 0x884   :  { %v787_v15 = vmul.f32 %v1863_v35, %v778_v14 }
 0x886   :  { %789 = vrot.lane.b32.xlu0 %v787_v15, %s1994_s23 }
 0x8f8   :  { %v2380_v16 = vpop.permute.xlu0 %789 }
 0x8f9   :  { %1470 = vmatmul.mubr.msk.f32.vlgmr.msra.gmra.mrb[0].mxu1 %vm406_vm9, %v2380_v16 }
 0x8fa   :  { %1719 = vmatpush1.bf16.msra.mxu1 %v2211_v3  ;;  %948 = vmatprep.mubr.f32.mxu1 %v1993_v56 }
 0x8fb   :  { %1721 = vmatprep.subr.bf16.mxu1 %v2214_v4 }
 0x8fe   :  { %1723 = vmatpush1.bf16.msra.mxu1 %v2231_v11 }
 0x8ff   :  { %1725 = vmatprep.subr.bf16.mxu1 %v2234_v12 }
 0x902   :  { %1727 = vmatpush1.bf16.msra.mxu1 %v2249_v17 }
 0x903   :  { %1729 = vmatprep.subr.bf16.mxu1 %v2268_v24 }
 0x906   :  { %1731 = vmatpush1.bf16.msra.mxu1 %v2272_v25 }
 0x907   :  { %1733 = vmatprep.subr.bf16.mxu1 %v2188_v59 }
 0x9cc   :  { %v859_v18 = vpop.f32.mrb[0].mxu1 }
 0x9cd   :  { %v1816_v19 = vadd.f32 %v859_v18, %v2312_v39  ;;  %v861_v20 = vpop.f32.mrb[1].mxu1 }
 0x9ce   :  { %v1817_v21 = vadd.f32 %v861_v20, %v2314_v40 }
 0x9cf   :  { %1864 = vtanh.f32 %v1816_v19 }
 0x9d0   :  { %1866 = vtanh.f32 %v1817_v21  ;;  %v384_v21 = vadd.f32 %v2316_v41, %v2312_v39 }
 0x9d9   :  { %v1865_v22 = vpop.eup %1864 }
 0x9da   :  { %v866_v23 = vadd.f32 1.0, %v1865_v22  ;;  %v1867_v27 = vpop.eup %1866 }
 0x9db   :  { %v868_v59 = vadd.f32 1.0, %v1867_v27 }
 0x9dc   :  { %v867_v26 = vmul.f32 0.5, %v866_v23 }
 0x9dd   :  { %v869_v37 = vmul.f32 0.5, %v868_v59  ;;  %v1266_v59 = vld [vmem:[#allocation2 + $0x10] sm:$0xff] }
 0x9de   :  { %v871_v28 = vmul.f32 %v1867_v27, %v867_v26  ;;  %v870_v29 = vmul.f32 %v867_v26, %v785_v13 }
 0x9e0   :  { %873 = vrot.lane.b32.xlu1 %v871_v28, %s1994_s23 }
 0xa52   :  { %v874_v30 = vpop.permute.xlu1 %873 }
 0xa53   :  { %v876_v36 = vadd.f32 %v874_v30, %v870_v29 }
 0xa55   :  { %1868 = vtanh.f32 %v876_v36 }
 0xa5f   :  { %v1869_v38 = vpop.eup %1868 }
 0xa60   :  { %v878_v43 = vmul.f32 %v1869_v38, %v869_v37  ;;  %v1267_v37 = vld [vmem:[#allocation2 + $0x18] sm:$0xff] }
 0xa61   :  { %v1784_v38 = vpack.c.bf16 %v1267_v37, %v1266_v59 }
 0xa62   :  { %880 = vrot.lane.b32.xlu0 %v878_v43, %s1994_s23 }
 0xad4   :  { %v2397_v44 = vpop.permute.xlu0 %880 }
 0xad5   :  { %1471 = vmatmul.mubr.msk.f32.vlgmr.msra.gmra.mrb[2].mxu1 %vm406_vm9, %v2397_v44 }
 0xad6   :  { %1735 = vmatpush1.bf16.msra.mxu1 %v2211_v3  ;;  %1039 = vmatprep.mubr.f32.mxu1 %v1993_v56 }
 0xad7   :  { %1737 = vmatprep.subr.bf16.mxu1 %v2214_v4 }
 0xada   :  { %1739 = vmatpush1.bf16.msra.mxu1 %v2231_v11 }
 0xadb   :  { %1741 = vmatprep.subr.bf16.mxu1 %v2234_v12 }
 0xade   :  { %1743 = vmatpush1.bf16.msra.mxu1 %v2249_v17 }
 0xadf   :  { %1745 = vmatprep.subr.bf16.mxu1 %v2268_v24 }
 0xae2   :  { %1747 = vmatpush1.bf16.msra.mxu1 %v2272_v25 }
 0xba8   :  { %v950_v45 = vpop.f32.mrb[2].mxu1 }
 0xba9   :  { %v1818_v47 = vadd.f32 %v950_v45, %v2312_v39  ;;  %v952_v48 = vpop.f32.mrb[3].mxu1  ;;  %v1268_v45 = vld [vmem:[#allocation2 + $0x20] sm:$0xff] }
 0xbaa   :  { %v1819_v49 = vadd.f32 %v952_v48, %v2314_v40 }
 0xbab   :  { %1870 = vtanh.f32 %v1818_v47  ;;  %v1269_v47 = vld [vmem:[#allocation2 + $0x28] sm:$0xff] }
 0xbac   :  { %1872 = vtanh.f32 %v1819_v49  ;;  %v1788_v48 = vpack.c.bf16 %v1269_v47, %v1268_v45  ;;  %v1270_v49 = vld [vmem:[#allocation2 + $0x30] sm:$0xff] }
 0xbb5   :  { %v1871_v50 = vpop.eup %1870 }
 0xbb6   :  { %v957_v51 = vadd.f32 1.0, %v1871_v50  ;;  %v1873_v53 = vpop.eup %1872  ;;  %v1271_v50 = vld [vmem:[#allocation2 + $0x38] sm:$0xff] }
 0xbb7   :  { %v959_v57 = vadd.f32 1.0, %v1873_v53 }
 0xbb8   :  { %v958_v52 = vmul.f32 0.5, %v957_v51  ;;  %v1792_v51 = vpack.c.bf16 %v1271_v50, %v1270_v49 }
 0xbb9   :  { %v960_v61 = vmul.f32 0.5, %v959_v57 }
 0xbba   :  { %v962_v54 = vmul.f32 %v1873_v53, %v958_v52  ;;  %v961_v31 = vmul.f32 %v958_v52, %v876_v36 }
 0xbbc   :  { %964 = vrot.lane.b32.xlu1 %v962_v54, %s1994_s23 }
 0xc2e   :  { %v965_v55 = vpop.permute.xlu1 %964 }
 0xc2f   :  { %v967_v32 = vadd.f32 %v965_v55, %v961_v31 }
 0xc31   :  { %1874 = vtanh.f32 %v967_v32 }
 0xc3b   :  { %v1875_v62 = vpop.eup %1874 }
 0xc3c   :  { %v969_v63 = vmul.f32 %v1875_v62, %v960_v61 }
 0xc3e   :  { %971 = vrot.lane.b32.xlu0 %v969_v63, %s1994_s23 }
 0xcb0   :  { %v2413_v0 = vpop.permute.xlu0 %971 }
 0xcb1   :  { %1472 = vmatmul.mubr.msk.f32.vlgmr.msra.gmra.mrb[4].mxu1 %vm406_vm9, %v2413_v0 }
 0xd84   :  { %v1041_v1 = vpop.f32.mrb[4].mxu1 }
 0xd85   :  { %v1820_v2 = vadd.f32 %v1041_v1, %v2312_v39  ;;  %v1043_v5 = vpop.f32.mrb[5].mxu1 }
 0xd86   :  { %v1821_v6 = vadd.f32 %v1043_v5, %v2314_v40 }
 0xd87   :  { %1876 = vtanh.f32 %v1820_v2 }
 0xd88   :  { %1878 = vtanh.f32 %v1821_v6 }
 0xd91   :  { %v1877_v7 = vpop.eup %1876 }
 0xd92   :  { %v1048_v60 = vadd.f32 1.0, %v1877_v7  ;;  %v1879_v9 = vpop.eup %1878 }
 0xd93   :  { %v1050_v35 = vadd.f32 1.0, %v1879_v9 }
 0xd94   :  { %v1049_v8 = vmul.f32 0.5, %v1048_v60 }
 0xd95   :  { %v1051_v15 = vmul.f32 0.5, %v1050_v35 }
 0xd96   :  { %v1053_v10 = vmul.f32 %v1879_v9, %v1049_v8  ;;  %v1052_v13 = vmul.f32 %v1049_v8, %v967_v32 }
 0xd98   :  { %1055 = vrot.lane.b32.xlu1 %v1053_v10, %s1994_s23 }
 0xe0a   :  { %v1056_v34 = vpop.permute.xlu1 %1055 }
 0xe0b   :  { %v1058_v14 = vadd.f32 %v1056_v34, %v1052_v13 }
 0xe0d   :  { %1880 = vtanh.f32 %v1058_v14 }
 0xe17   :  { %v1881_v18 = vpop.eup %1880 }
 0xe18   :  { %v1060_v19 = vmul.f32 %v1881_v18, %v1051_v15 }
 0xe1a   :  { %1062 = vrot.lane.b32.xlu0 %v1060_v19, %s1994_s23 }
 0xe8c   :  { %v1063_v20 = vpop.permute.xlu0 %1062 }
 0xe8d   :  { %1473 = vmatmul.mubr.msk.f32.vlgmr.msra.gmra.mrb[16].mxu0 %vm406_vm9, %v1063_v20 }
 0xe8e   :  { %1767 = vmatpush1.bf16.msra.mxu0 %v2211_v3  ;;  %1221 = vmatprep.mubr.f32.mxu0 %v1993_v56  ;;  %v386_v3 = vadd.f32 %v2318_v42, %v2314_v40 }
 0xe8f   :  { %1769 = vmatprep.subr.bf16.mxu0 %v2214_v4 }
 0xe92   :  { %1771 = vmatpush1.bf16.msra.mxu0 %v2231_v11 }
 0xe93   :  { %1773 = vmatprep.subr.bf16.mxu0 %v2234_v12 }
 0xe96   :  { %1775 = vmatpush1.bf16.msra.mxu0 %v2249_v17 }
 0xe97   :  { %1777 = vmatprep.subr.bf16.mxu0 %v2268_v24  ;;  %v1264_v24 = vld [vmem:[#allocation2] sm:$0xff] }
 0xe9a   :  { %1779 = vmatpush1.bf16.msra.mxu0 %v2272_v25  ;;  %v1265_v25 = vld [vmem:[#allocation2 + $0x8] sm:$0xff] }
 0xe9b   :  { %v1780_v28 = vpack.c.bf16 %v1265_v25, %v1264_v24 }
 0xe9d   :  { %1781 = vmatprep.subr.bf16.mxu0 %v1780_v28 }
 0xf60   :  { %v1132_v22 = vpop.f32.mrb[16].mxu0 }
 0xf61   :  { %v1133_v56 = vadd.f32 %v1132_v22, %v384_v21  ;;  %v1134_v23 = vpop.f32.mrb[17].mxu0 }
 0xf62   :  { %v1135_v4 = vadd.f32 %v1134_v23, %v386_v3 }
 0xf63   :  { %1882 = vtanh.f32 %v1133_v56 }
 0xf64   :  { %1884 = vtanh.f32 %v1135_v4 }
 0xf6d   :  { %v1883_v11 = vpop.eup %1882 }
 0xf6e   :  { %v1139_v12 = vadd.f32 1.0, %v1883_v11  ;;  %v1885_v17 = vpop.eup %1884 }
 0xf6f   :  { %v1141_v40 = vadd.f32 1.0, %v1885_v17 }
 0xf70   :  { %v1140_v26 = vmul.f32 0.5, %v1139_v12 }
 0xf71   :  { %v1142_v42 = vmul.f32 0.5, %v1141_v40 }
 0xf72   :  { %v1144_v27 = vmul.f32 %v1885_v17, %v1140_v26  ;;  %v1143_v39 = vmul.f32 %v1140_v26, %v1058_v14 }
 0xf74   :  { %1146 = vrot.lane.b32.xlu1 %v1144_v27, %s1994_s23 }
 0xfe6   :  { %v1147_v41 = vpop.permute.xlu1 %1146 }
 0xfe7   :  { %v2435_v29 = vadd.f32 %v1147_v41, %v1143_v39 }
 0xfe9   :  { %1886 = vtanh.f32 %v2435_v29 }
 0xff3   :  { %v1887_v30 = vpop.eup %1886 }
 0xff4   :  { %v1151_v36 = vmul.f32 %v1887_v30, %v1142_v42 }
 0xff6   :  { %1153 = vrot.lane.b32.xlu0 %v1151_v36, %s1994_s23 }
0x1068   :  { %v2439_v43 = vpop.permute.xlu0 %1153 }
0x1069   :  { %1474 = vmatmul.mubr.msk.f32.vlgmr.msra.gmra.mrb[18].mxu0 %vm406_vm9, %v2439_v43 }
0x106a   :  { %1783 = vmatpush3.bf16.msra.mxu0 %v1780_v28  ;;  %1584 = vmatprep.mubr.msk.f32.mxu0 %vm406_vm9, %v2342_v33 }
0x106b   :  { %1785 = vmatprep.subr.bf16.mxu0 %v1784_v38 }
0x106e   :  { %1787 = vmatpush3.bf16.msra.mxu0 %v1784_v38 }
0x106f   :  { %1789 = vmatprep.subr.bf16.mxu0 %v1788_v48 }
0x1072   :  { %1791 = vmatpush3.bf16.msra.mxu0 %v1788_v48 }
0x1073   :  { %1793 = vmatprep.subr.bf16.mxu0 %v1792_v51 }
0x1076   :  { %1795 = vmatpush3.bf16.msra.mxu0 %v1792_v51 }
0x1079   :  { %1585 = vmatmul.mubr.msk.f32.vlgmr.msra.gmra.mrb[20].mxu0 %vm406_vm9, %v2361_v58 }
0x107a   :  { %1587 = vmatprep.mubr.msk.f32.mxu0 %vm406_vm9, %v2380_v16  ;;  %v2459_v16 = vld [vmem:[%s2529_s8] ss:$0 sm:$0xff]  ;;  %s1995_s8 = smov [#allocation6]  }
0x107b   :  { %s1416_s15 = sshll.u32 %s1995_s8, 4  ;;  %s1417_s15 = int_to_ptr.vmem [resolvable:$true] %s1416_s15 }
0x107c   :  { %s1916_s16 = scalar_lea.vmem %s1417_s15, 128  ;;  %p1921_p9 = scmp.lt.s32.totalorder %s1417_s15, %s1417_s15 }
0x107d   :  { %1588 = vmatmul.mubr.msk.f32.gmra.mrb[22].mxu0 %vm406_vm9, %v2397_v44  ;;  %p1917_p8 = scmp.ne.s32.totalorder %s1417_s15, %s1916_s16  ;;  %p1922_p10 = scmp.lt.s32.totalorder %s1916_s16, %s1916_s16 }
0x107e   :  { %1590 = vmatprep.mubr.msk.f32.mxu0 %vm406_vm9, %v2413_v0 }
0x107f   :  { %p1923_p11 = por %p1922_p10, %p1921_p9 }
0x1081   :  { %1591 = vmatmul.mubr.msk.f32.gmra.mrb[24].mxu0 %vm406_vm9, %v1063_v20  ;;  %p1924_p12 = pnand %p1923_p11, %p1917_p8 }
0x1082   :  { %1593 = vmatprep.mubr.msk.f32.mxu0 %vm406_vm9, %v2439_v43 }
0x113c   :  { %v1223_v33 = vpop.f32.mrb[18].mxu0 }
0x113d   :  { %v1224_v52 = vadd.f32 %v1223_v33, %v384_v21  ;;  %v1225_v53 = vpop.f32.mrb[19].mxu0 }
0x113e   :  { %v1226_v54 = vadd.f32 %v1225_v53, %v386_v3 }
0x113f   :  { %1888 = vtanh.f32 %v1224_v52 }
0x1140   :  { %1890 = vtanh.f32 %v1226_v54 }
0x1149   :  { %v1889_v58 = vpop.eup %1888 }
0x114a   :  { %v1230_v31 = vadd.f32 1.0, %v1889_v58  ;;  %v1891_v32 = vpop.eup %1890 }
0x114b   :  { %v1232_v34 = vadd.f32 1.0, %v1891_v32 }
0x114c   :  { %v1231_v44 = vmul.f32 0.5, %v1230_v31  ;;  %v1586_v55 = vpop.f32.mrb[20].mxu0 }
0x114d   :  { %v1355_v57 = vadd.f32 %v1586_v55, %v2459_v16  ;;  %v1349_v61 = vpop.f32.mrb[21].mxu0  ;;  %v1233_v14 = vmul.f32 0.5, %v1232_v34 }
0x114e   :  { %v1350_v62 = vadd.f32 %v2459_v16, %v1349_v61  ;;  %v1235_v63 = vmul.f32 %v1891_v32, %v1231_v44  ;;  %v1234_v9 = vmul.f32 %v1231_v44, %v2435_v29 }
0x114f   :  { %1389 = vst [vmem:[#allocation5 + $0x8] sm:$0xff] %v1355_v57 }
0x1150   :  { %1388 = vst [vmem:[#allocation5] sm:$0xff] %v1350_v62  ;;  %v1589_v0 = vpop.f32.mrb[22].mxu0  ;;  %1237 = vrot.lane.b32.xlu1 %v1235_v63, %s1994_s23 }
0x1151   :  { %v1365_v1 = vadd.f32 %v1589_v0, %v2459_v16  ;;  %v1359_v2 = vpop.f32.mrb[23].mxu0 }
0x1152   :  { %v1360_v5 = vadd.f32 %v2459_v16, %v1359_v2 }
0x1153   :  { %1391 = vst [vmem:[#allocation5 + $0x18] sm:$0xff] %v1365_v1 }
0x1154   :  { %1390 = vst [vmem:[#allocation5 + $0x10] sm:$0xff] %v1360_v5  ;;  %v1592_v6 = vpop.f32.mrb[24].mxu0 }
0x1155   :  { %v1375_v7 = vadd.f32 %v1592_v6, %v2459_v16  ;;  %v1369_v60 = vpop.f32.mrb[25].mxu0 }
0x1156   :  { %v1370_v8 = vadd.f32 %v2459_v16, %v1369_v60 }
0x1157   :  { %1393 = vst [vmem:[#allocation5 + $0x28] sm:$0xff] %v1375_v7 }
0x1158   :  { %1392 = vst [vmem:[#allocation5 + $0x20] sm:$0xff] %v1370_v8 }
0x11c2   :  { %v1238_v10 = vpop.permute.xlu1 %1237 }
0x11c3   :  { %v1240_v13 = vadd.f32 %v1238_v10, %v1234_v9 }
0x11c5   :  { %1892 = vtanh.f32 %v1240_v13 }
0x11cf   :  { %v1893_v35 = vpop.eup %1892 }
0x11d0   :  { %v1242_v15 = vmul.f32 %v1893_v35, %v1233_v14 }
0x11d2   :  { %1247 = vrot.lane.b32.xlu0 %v1242_v15, %s1994_s23 }
0x1244   :  { %v1248_v18 = vpop.permute.xlu0 %1247 }
0x1245   :  { %v1251_v19 = vsel %vm1244_vm11, %v1248_v18, %v2439_v43 }
0x1246   :  { %1262 = vrot.lane.b32.xlu1 %v1251_v19, %s1994_s23  ;;  %1396 = vst.msk [vmem:[#allocation6] sm:$0xff] %vm406_vm9, %v1251_v19 }
0x124a   :  { %1253 = vrot.lane.b32.xlu1 %v1240_v13, %s1994_s23 }
0x12b8   :  { %v1263_v20 = vpop.permute.xlu1 %1262 }
0x12b9   :  { %1279 = vrot.lane.b32.xlu0 %v1263_v20, %s1994_s23 }
0x12bc   :  { %v1254_v22 = vpop.permute.xlu1 %1253 }
0x12bd   :  { %1257 = vrot.lane.b32.xlu0 %v2435_v29, %s1994_s23 }
0x132b   :  { %v1280_v21 = vpop.permute.xlu0 %1279 }
0x132c   :  { %1594 = vmatmul.mubr.msk.f32.gmra.mrb[26].mxu0 %vm406_vm9, %v1280_v21 }
0x132f   :  { %v1258_v46 = vpop.permute.xlu0 %1257 }
0x1330   :  { %v1260_v3 = vsel %vm1244_vm11, %v1254_v22, %v1258_v46 }
0x1331   :  { %1397 = vst.msk [vmem:[#allocation8] sm:$0xff] %vm406_vm9, %v1260_v3 }
0x1332   :  { %1927 = shalt.err (!%p1924_p12)
}
0x1333   :  { %s1928_s7 = scalar_lea.hbm %s2531_s10, 128 }
0x1334   :  { %p1929_p13 = scmp.ne.s32.totalorder %s2531_s10, %s1928_s7  ;;  %p1932_p0 = scmp.lt.u32.totalorder %s1928_s7, %s2531_s10 }
0x1336   :  { %p1934_p1 = pnand %p1932_p0, %p1929_p13 }
0x1338   :  { %1937 = shalt.err (!%p1934_p1)
}
0x1339   :  { %1419 = dma.vmem_to_hbm [thread:$0]  %s1417_s15, 128, %s2531_s10, [#allocation7]  }
0x133a   :  { %s1996_s22 = smov [#allocation8]  }
0x133b   :  { %s1426_s24 = sshll.u32 %s1996_s22, 4  ;;  %s1427_s24 = int_to_ptr.vmem [resolvable:$true] %s1426_s24 }
0x133c   :  { %s1938_s25 = scalar_lea.vmem %s1427_s24, 128  ;;  %p1943_p3 = scmp.lt.s32.totalorder %s1427_s24, %s1427_s24 }
0x133d   :  { %p1939_p2 = scmp.ne.s32.totalorder %s1427_s24, %s1938_s25  ;;  %p1944_p4 = scmp.lt.s32.totalorder %s1938_s25, %s1938_s25 }
0x133f   :  { %p1945_p5 = por %p1944_p4, %p1943_p3 }
0x1341   :  { %p1946_p6 = pnand %p1945_p5, %p1939_p2 }
0x1343   :  { %1949 = shalt.err (!%p1946_p6)
}
0x1344   :  { %s1950_s30 = scalar_lea.hbm %s2532_s11, 128 }
0x1345   :  { %p1951_p7 = scmp.ne.s32.totalorder %s2532_s11, %s1950_s30  ;;  %p1954_p8 = scmp.lt.u32.totalorder %s1950_s30, %s2532_s11 }
0x1347   :  { %p1956_p9 = pnand %p1954_p8, %p1951_p7 }
0x1349   :  { %1959 = shalt.err (!%p1956_p9)
}
0x134a   :  { %1429 = dma.vmem_to_hbm [thread:$0]  %s1427_s24, 128, %s2532_s11, [#allocation7]  }
0x134b   :  { %s1997_s0 = smov [#allocation5]  }
0x134c   :  { %s1403_s6 = sshll.u32 %s1997_s0, 4  ;;  %s1404_s6 = int_to_ptr.vmem [resolvable:$true] %s1403_s6 }
0x134d   :  { %s1960_s14 = scalar_lea.vmem %s1404_s6, 1024  ;;  %p1965_p11 = scmp.lt.s32.totalorder %s1404_s6, %s1404_s6 }
0x134e   :  { %p1961_p10 = scmp.ne.s32.totalorder %s1404_s6, %s1960_s14  ;;  %p1966_p12 = scmp.lt.s32.totalorder %s1960_s14, %s1960_s14 }
0x1350   :  { %p1967_p13 = por %p1966_p12, %p1965_p11 }
0x1352   :  { %p1968_p0 = pnand %p1967_p13, %p1961_p10 }
0x13ff   :  { %v1595_v56 = vpop.f32.mrb[26].mxu0 }
0x1400   :  { %v1385_v23 = vadd.f32 %v1595_v56, %v2459_v16  ;;  %v1379_v4 = vpop.f32.mrb[27].mxu0 }
0x1401   :  { %v1380_v11 = vadd.f32 %v2459_v16, %v1379_v4 }
0x1402   :  { %1395 = vst [vmem:[#allocation5 + $0x38] sm:$0xff] %v1385_v23 }
0x1403   :  { %1394 = vst [vmem:[#allocation5 + $0x30] sm:$0xff] %v1380_v11 }
0x1404   :  { %1971 = shalt.err (!%p1968_p0)
}
0x1405   :  { %s1972_s15 = scalar_lea.hbm %s2530_s9, 1024 }
0x1406   :  { %p1973_p1 = scmp.ne.s32.totalorder %s2530_s9, %s1972_s15  ;;  %p1976_p2 = scmp.lt.u32.totalorder %s1972_s15, %s2530_s9 }
0x1408   :  { %p1978_p3 = pnand %p1976_p2, %p1973_p1 }
0x140a   :  { %1981 = shalt.err (!%p1978_p3)
}
0x140b   :  { %1409 = dma.vmem_to_hbm [thread:$0]  %s1404_s6, 1024, %s2530_s9, [#allocation4], %s1989_s27, %s1989_s27, %s1990_s28  }
0x140c   :  { %1984 = dma.done.wait [#allocation4], 1024  }
0x140d   :  { %1985 = vsyncadd [#allocation4], 4294966272 }
0x140e   :  { %1986 = dma.done.wait [#allocation7], 256  }
0x140f   :  { %1987 = vsyncadd [#allocation7], 4294967040 }
0x1410   :  { %1439 = vsyncpa [#allocation3], 1 }
0x1411   :  { %1440 = vsyncpa [#allocation4], 1 }
0x1412   :  { %1441 = vsyncpa [#allocation7], 1 }

</bundles_post_ra>
